<compile_context>
chip_gen: v7x
topology: tpu7x:2x2x1
jax: 0.10.0
libtpu: 0.0.40
codegen_flags: <defaults>
</compile_context>

<pallas_src>
import math
import functools

import jax
import jax.numpy as jnp
from jax import lax
from jax.experimental import pallas as pl
from jax.experimental.pallas import tpu as pltpu


def _pma_kernel(q_ref, qx_ref, hm_ref, x_ref,
                wkv_ref, bkv_ref, wo_ref, bo_ref,
                o_ref, *, num_heads: int, num_seeds: int, n_set: int, block_b: int):
    H, S, N, Bt = num_heads, num_seeds, n_set, block_b
    C = q_ref.shape[-1]
    M = Bt * N

    x2 = x_ref[...]                                                  # (Bt*N, C)

    # Fused K/V projection: one dense (Bt*N, C) @ (C, 2C) MXU matmul with f32
    # accumulation.  The 2C-wide output keeps the 256-lane MXU of v6e/v7x full.
    kv = jnp.dot(x2, wkv_ref[...], preferred_element_type=jnp.float32) + bkv_ref[...]
    k2 = kv[:, :C]                                                   # (Bt*N, C)
    v2 = kv[:, C:]                                                   # (Bt*N, C)

    # Attention scores for all heads / seeds at once.  qx is the head-block-
    # diagonal expansion of Q (pre-scaled by 1/sqrt(C)), so a single 2-D
    # contraction over C yields scores[h*S+s, b*N+n] for every head — no per-head
    # slicing and no materialized transpose of K.
    scores = lax.dot_general(qx_ref[...], k2,
                             dimension_numbers=(((1,), (1,)), ((), ())),
                             preferred_element_type=jnp.float32)     # (H*S, Bt*N)

    # Softmax over the SEED axis (torch.softmax(attention_score, dim=1) on the
    # (B*H, S, N) stacked tensor).  Independent per (head, sample, element).
    s3 = scores.reshape(H, S, M)
    s3 = s3 - jnp.max(s3, axis=1, keepdims=True)
    e = jnp.exp(s3)
    a = e * pl.reciprocal(jnp.sum(e, axis=1, keepdims=True), approx=False)  # (H, S, M)

    # A @ V, batched over the Bt samples in this block (batch dim leading).
    a_b = jnp.transpose(a.reshape(H * S, Bt, N), (1, 0, 2))          # (Bt, H*S, N)
    v_b = v2.reshape(Bt, N, C)
    av = jnp.einsum('bpn,bnc->bpc', a_b, v_b,
                    preferred_element_type=jnp.float32)              # (Bt, H*S, C)

    # Per-head channel selection: keep columns h*ds:(h+1)*ds from row block h.
    hm = hm_ref[...].reshape(1, H, 1, C)
    out = jnp.sum(av.reshape(Bt, H, S, C) * hm, axis=1)              # (Bt, S, C)

    # Residual with Q, then fc_o projection + ReLU residual.
    out = out + q_ref[...][None]                                     # (Bt, S, C)
    out2 = out.reshape(Bt * S, C)
    proj = jnp.dot(out2, wo_ref[...], preferred_element_type=jnp.float32) + bo_ref[...]
    o_ref[...] = (out2 + jnp.maximum(proj, 0.0)).astype(o_ref.dtype)


def _pick_block_b(B, N, target_rows=256):
    """Smallest divisor of B giving >= target_rows projection rows, keeping >= 2 steps."""
    divisors = [d for d in range(1, B + 1) if B % d == 0]
    cands = [d for d in divisors if B // d >= 2] or divisors
    for d in cands:
        if d * N >= target_rows:
            return d
    return cands[-1]


def pma_forward(x, params, *, num_heads: int, block_b: int | None = None):
    """x: (B, N, C) float32. params: dict of weights. Returns (B, num_seeds, C)."""
    B, N, C = x.shape
    S = params["S"].shape[1]
    H = num_heads
    assert C % H == 0, "channels must be divisible by num_heads"
    ds = C // H

    Bt = _pick_block_b(B, N) if block_b is None else block_b
    assert B % Bt == 0

    # Hoisted, batch-invariant seed projection  Q = seed @ Wq + bq      (S, C)
    q = params["S"][0] @ params["wq"] + params["bq"][0]
    # Head membership mask of each channel column                        (H, C)
    head_mask = (jnp.arange(C, dtype=jnp.int32)[None, :] // ds ==
                 jnp.arange(H, dtype=jnp.int32)[:, None]).astype(x.dtype)
    # Head-block-diagonal expansion of Q, pre-scaled by 1/sqrt(C)        (H*S, C)
    qx = (q[None, :, :] * head_mask[:, None, :] / math.sqrt(C)).reshape(H * S, C)

    # Fused K/V projection weights (column-concatenated):                (C, 2C)
    wkv = jnp.concatenate([params["wk"], params["wv"]], axis=1)
    bkv = jnp.concatenate([params["bk"], params["bv"]], axis=1)          # (1, 2C)

    x2 = x.reshape(B * N, C)          # lane-dense 2-D slab for the kernel

    full = lambda shape: pl.BlockSpec(shape, lambda i: tuple(0 for _ in shape))
    kernel = functools.partial(_pma_kernel, num_heads=H, num_seeds=S,
                               n_set=N, block_b=Bt)

    out2 = pl.pallas_call(
        kernel,
        out_shape=jax.ShapeDtypeStruct((B * S, C), x.dtype),
        grid_spec=pltpu.PrefetchScalarGridSpec(
            num_scalar_prefetch=0,
            grid=(B // Bt,),
            in_specs=[
                full((S, C)),                                   # q   (shared)
                full((H * S, C)),                               # qx  (shared)
                full((H, C)),                                   # head mask
                pl.BlockSpec((Bt * N, C), lambda i: (i, 0)),    # x block
                # Grid-invariant weights: index_map is constant so they are
                # DMA'd once and reused across all grid steps.
                full((C, 2 * C)), full((1, 2 * C)),             # Wkv, bkv (fused)
                full((C, C)), full((1, C)),                     # Wo, bo
            ],
            out_specs=pl.BlockSpec((Bt * S, C), lambda i: (i, 0)),
        ),
        compiler_params=pltpu.CompilerParams(dimension_semantics=("parallel",)),
    )(q, qx, head_mask, x2, wkv, bkv, params["wo"], params["bo"])

    return out2.reshape(B, S, C)


def init_params(key, channels, num_seeds):
    """Deterministic synthetic parameters (shapes match the PyTorch module)."""
    ks = jax.random.split(key, 9)
    bound_s = math.sqrt(6.0 / (num_seeds + channels))
    S = jax.random.uniform(ks[0], (1, num_seeds, channels), jnp.float32, -bound_s, bound_s)

    def linear(kw, kb):
        bound = 1.0 / math.sqrt(channels)
        # stored as (in, out) — already transposed relative to torch's (out, in)
        w = jax.random.uniform(kw, (channels, channels), jnp.float32, -bound, bound)
        b = jax.random.uniform(kb, (1, channels), jnp.float32, -bound, bound)
        return w, b

    wq, bq = linear(ks[1], ks[2])
    wk, bk = linear(ks[3], ks[4])
    wv, bv = linear(ks[5], ks[6])
    wo, bo = linear(ks[7], ks[8])
    return dict(S=S, wq=wq, bq=bq, wk=wk, bk=bk, wv=wv, bv=bv, wo=wo, bo=bo)


def pma_reference(x, params, *, num_heads: int):
    """Pure-JAX reference mirroring the PyTorch forward exactly (for validation)."""
    B, N, C = x.shape
    S = params["S"].shape[1]
    seed = jnp.broadcast_to(params["S"], (B, S, C))

    Q = seed @ params["wq"] + params["bq"][0]
    K = x @ params["wk"] + params["bk"][0]
    V = x @ params["wv"] + params["bv"][0]

    def split_heads(t):   # torch.cat(t.split(ds, 2), dim=0)
        return jnp.concatenate(jnp.split(t, num_heads, axis=2), axis=0)

    Q_, K_, V_ = split_heads(Q), split_heads(K), split_heads(V)
    scores = jnp.einsum("bsd,bnd->bsn", Q_, K_) / math.sqrt(C)
    A = jax.nn.softmax(scores, axis=1)            # dim=1 == seed axis
    out = Q_ + jnp.einsum("bsn,bnd->bsd", A, V_)
    out = jnp.concatenate(jnp.split(out, num_heads, axis=0), axis=2)  # (B, S, C)
    out = out + jax.nn.relu(out @ params["wo"] + params["bo"][0])
    return out


# TODO(synk): the graph / message-passing (Conv) K,V path and to_dense_batch have no
# clean Pallas equivalent here; only the dense-tensor (graph=None, layer_norm=False)
# forward is implemented.

if __name__ == "__main__":
    B, N, C = 8, 64, 128
    num_heads, num_seeds = 4, 4

    key = jax.random.PRNGKey(0)
    kx, kp = jax.random.split(key)
    x = jax.random.normal(kx, (B, N, C), jnp.float32)
    params = init_params(kp, C, num_seeds)

    out = jax.block_until_ready(pma_forward(x, params, num_heads=num_heads))

    ref = pma_reference(x, params, num_heads=num_heads)
    assert out.shape == (B, num_seeds, C)
    assert jnp.allclose(out, ref, atol=1e-4, rtol=1e-4), "mismatch vs reference"

    print("KERNEL_OK")
</pallas_src>

<mosaic_0001>
module attributes {stable_mosaic.version = 11 : i64} {
  func.func @_pma_kernel(%arg0: i32, %arg1: memref<4x128xf32, #tpu.memory_space<vmem>>, %arg2: memref<16x128xf32, #tpu.memory_space<vmem>>, %arg3: memref<4x128xf32, #tpu.memory_space<vmem>>, %arg4: memref<256x128xf32, #tpu.memory_space<vmem>>, %arg5: memref<128x256xf32, #tpu.memory_space<vmem>>, %arg6: memref<1x256xf32, #tpu.memory_space<vmem>>, %arg7: memref<128x128xf32, #tpu.memory_space<vmem>>, %arg8: memref<1x128xf32, #tpu.memory_space<vmem>>, %arg9: memref<16x128xf32, #tpu.memory_space<vmem>>) attributes {dimension_semantics = [#tpu.dimension_semantics<parallel>], iteration_bounds = array<i64: 2>, scalar_prefetch = 0 : i64, scratch_operands = 0 : i64, tpu.core_type = #tpu.core_type<tc>, window_params = [{pipeline_mode = #tpu.pipeline_mode<synchronous>, transform_indices = @transform_0, window_bounds = array<i64: 4, 128>}, {pipeline_mode = #tpu.pipeline_mode<synchronous>, transform_indices = @transform_1, window_bounds = array<i64: 16, 128>}, {pipeline_mode = #tpu.pipeline_mode<synchronous>, transform_indices = @transform_2, window_bounds = array<i64: 4, 128>}, {transform_indices = @transform_3, window_bounds = array<i64: 256, 128>}, {pipeline_mode = #tpu.pipeline_mode<synchronous>, transform_indices = @transform_4, window_bounds = array<i64: 128, 256>}, {pipeline_mode = #tpu.pipeline_mode<synchronous>, transform_indices = @transform_5, window_bounds = array<i64: 1, 256>}, {pipeline_mode = #tpu.pipeline_mode<synchronous>, transform_indices = @transform_6, window_bounds = array<i64: 128, 128>}, {pipeline_mode = #tpu.pipeline_mode<synchronous>, transform_indices = @transform_7, window_bounds = array<i64: 1, 128>}, {transform_indices = @transform_8, window_bounds = array<i64: 16, 128>}]} {
    %c0 = arith.constant 0 : index
    %c0_0 = arith.constant 0 : index
    %0 = vector.load %arg4[%c0, %c0_0] : memref<256x128xf32, #tpu.memory_space<vmem>>, vector<256x128xf32>
    %c0_1 = arith.constant 0 : index
    %c0_2 = arith.constant 0 : index
    %1 = vector.load %arg5[%c0_1, %c0_2] : memref<128x256xf32, #tpu.memory_space<vmem>>, vector<128x256xf32>
    %cst = arith.constant dense<0.000000e+00> : vector<256x256xf32>
    %2 = tpu.matmul %0, %1, %cst {dimension_numbers = #tpu.dot_dimension_numbers<[1], [0], [0], [1], [0, 0, 1, 1], [], []>} : vector<256x128xf32>, vector<128x256xf32>, vector<256x256xf32> -> vector<256x256xf32>
    %c0_3 = arith.constant 0 : index
    %c0_4 = arith.constant 0 : index
    %3 = vector.load %arg6[%c0_3, %c0_4] : memref<1x256xf32, #tpu.memory_space<vmem>>, vector<1x256xf32>
    %4 = vector.broadcast %3 : vector<1x256xf32> to vector<256x256xf32>
    %5 = arith.addf %2, %4 : vector<256x256xf32>
    %6 = vector.extract_strided_slice %5 {offsets = [0, 0], sizes = [256, 128], strides = [1, 1]} : vector<256x256xf32> to vector<256x128xf32>
    %7 = vector.extract_strided_slice %5 {offsets = [0, 128], sizes = [256, 128], strides = [1, 1]} : vector<256x256xf32> to vector<256x128xf32>
    %c0_5 = arith.constant 0 : index
    %c0_6 = arith.constant 0 : index
    %8 = vector.load %arg2[%c0_5, %c0_6] : memref<16x128xf32, #tpu.memory_space<vmem>>, vector<16x128xf32>
    %cst_7 = arith.constant dense<0.000000e+00> : vector<16x256xf32>
    %9 = tpu.matmul %8, %6, %cst_7 {dimension_numbers = #tpu.dot_dimension_numbers<[1], [1], [0], [0], [0, 0, 1, 0], [], []>} : vector<16x128xf32>, vector<256x128xf32>, vector<16x256xf32> -> vector<16x256xf32>
    %10 = vector.shape_cast %9 : vector<16x256xf32> to vector<4x4x256xf32>
    %cst_8 = arith.constant dense<0xFF800000> : vector<4x256xf32>
    %11 = vector.multi_reduction <maximumf>, %10, %cst_8 [1] : vector<4x4x256xf32> to vector<4x256xf32>
    %12 = vector.shape_cast %11 : vector<4x256xf32> to vector<4x1x256xf32>
    %13 = vector.broadcast %12 : vector<4x1x256xf32> to vector<4x4x256xf32>
    %14 = arith.subf %10, %13 : vector<4x4x256xf32>
    %15 = math.exp %14 : vector<4x4x256xf32>
    %cst_9 = arith.constant dense<0.000000e+00> : vector<4x256xf32>
    %16 = vector.multi_reduction <add>, %15, %cst_9 [1] : vector<4x4x256xf32> to vector<4x256xf32>
    %17 = vector.shape_cast %16 : vector<4x256xf32> to vector<4x1x256xf32>
    %18 = tpu.reciprocal %17 : vector<4x1x256xf32> -> vector<4x1x256xf32>
    %19 = vector.broadcast %18 : vector<4x1x256xf32> to vector<4x4x256xf32>
    %20 = arith.mulf %15, %19 : vector<4x4x256xf32>
    %21 = vector.shape_cast %20 : vector<4x4x256xf32> to vector<16x4x64xf32>
    %22 = tpu.transpose %21, [1, 0, 2] : vector<16x4x64xf32> -> vector<4x16x64xf32>
    %23 = vector.shape_cast %7 : vector<256x128xf32> to vector<4x64x128xf32>
    "tpu.trace_start"() <{level = 10 : i32, message = "bpn,bnc->bpc"}> : () -> ()
    %cst_10 = arith.constant dense<0.000000e+00> : vector<4x16x128xf32>
    %24 = tpu.matmul %22, %23, %cst_10 {dimension_numbers = #tpu.dot_dimension_numbers<[2], [1], [1], [2], [0, 0, 0, 1, 1, 2], [0], [0]>} : vector<4x16x64xf32>, vector<4x64x128xf32>, vector<4x16x128xf32> -> vector<4x16x128xf32>
    "tpu.trace_stop"() : () -> ()
    %c0_11 = arith.constant 0 : index
    %c0_12 = arith.constant 0 : index
    %25 = vector.load %arg3[%c0_11, %c0_12] : memref<4x128xf32, #tpu.memory_space<vmem>>, vector<4x128xf32>
    %26 = vector.shape_cast %25 : vector<4x128xf32> to vector<1x4x1x128xf32>
    %27 = vector.shape_cast %24 : vector<4x16x128xf32> to vector<4x4x4x128xf32>
    %28 = vector.broadcast %26 : vector<1x4x1x128xf32> to vector<4x4x4x128xf32>
    %29 = arith.mulf %27, %28 : vector<4x4x4x128xf32>
    %cst_13 = arith.constant dense<0.000000e+00> : vector<4x4x128xf32>
    %30 = vector.multi_reduction <add>, %29, %cst_13 [1] : vector<4x4x4x128xf32> to vector<4x4x128xf32>
    %c0_14 = arith.constant 0 : index
    %c0_15 = arith.constant 0 : index
    %31 = vector.load %arg1[%c0_14, %c0_15] : memref<4x128xf32, #tpu.memory_space<vmem>>, vector<4x128xf32>
    %32 = vector.shape_cast %31 : vector<4x128xf32> to vector<1x4x128xf32>
    %33 = vector.broadcast %32 : vector<1x4x128xf32> to vector<4x4x128xf32>
    %34 = arith.addf %30, %33 : vector<4x4x128xf32>
    %35 = vector.shape_cast %34 : vector<4x4x128xf32> to vector<16x128xf32>
    %c0_16 = arith.constant 0 : index
    %c0_17 = arith.constant 0 : index
    %36 = vector.load %arg7[%c0_16, %c0_17] : memref<128x128xf32, #tpu.memory_space<vmem>>, vector<128x128xf32>
    %cst_18 = arith.constant dense<0.000000e+00> : vector<16x128xf32>
    %37 = tpu.matmul %35, %36, %cst_18 {dimension_numbers = #tpu.dot_dimension_numbers<[1], [0], [0], [1], [0, 0, 1, 1], [], []>} : vector<16x128xf32>, vector<128x128xf32>, vector<16x128xf32> -> vector<16x128xf32>
    %c0_19 = arith.constant 0 : index
    %c0_20 = arith.constant 0 : index
    %38 = vector.load %arg8[%c0_19, %c0_20] : memref<1x128xf32, #tpu.memory_space<vmem>>, vector<1x128xf32>
    %39 = vector.broadcast %38 : vector<1x128xf32> to vector<16x128xf32>
    %40 = arith.addf %37, %39 : vector<16x128xf32>
    %cst_21 = arith.constant 0.000000e+00 : f32
    %41 = vector.broadcast %cst_21 : f32 to vector<16x128xf32>
    %42 = arith.maximumf %40, %41 : vector<16x128xf32>
    %43 = arith.addf %35, %42 : vector<16x128xf32>
    %c0_22 = arith.constant 0 : index
    %c0_23 = arith.constant 0 : index
    %44 = vector.load %arg9[%c0_22, %c0_23] : memref<16x128xf32, #tpu.memory_space<vmem>>, vector<16x128xf32>
    tpu.vector_store %arg9[%c0_22, %c0_23], %43 {strides = array<i32>} : memref<16x128xf32, #tpu.memory_space<vmem>>, vector<16x128xf32>,
    return
  }
  func.func @transform_0(%arg0: i32) -> (i32, i32) {
    %c0_i32 = arith.constant 0 : i32
    %c0_i32_0 = arith.constant 0 : i32
    %c0_i32_1 = arith.constant 0 : i32
    return %c0_i32, %c0_i32_0 : i32, i32
  }
  func.func @transform_1(%arg0: i32) -> (i32, i32) {
    %c0_i32 = arith.constant 0 : i32
    %c0_i32_0 = arith.constant 0 : i32
    %c0_i32_1 = arith.constant 0 : i32
    return %c0_i32, %c0_i32_0 : i32, i32
  }
  func.func @transform_2(%arg0: i32) -> (i32, i32) {
    %c0_i32 = arith.constant 0 : i32
    %c0_i32_0 = arith.constant 0 : i32
    %c0_i32_1 = arith.constant 0 : i32
    return %c0_i32, %c0_i32_0 : i32, i32
  }
  func.func @transform_3(%arg0: i32) -> (i32, i32) {
    %c0_i32 = arith.constant 0 : i32
    %c0_i32_0 = arith.constant 0 : i32
    return %arg0, %c0_i32 : i32, i32
  }
  func.func @transform_4(%arg0: i32) -> (i32, i32) {
    %c0_i32 = arith.constant 0 : i32
    %c0_i32_0 = arith.constant 0 : i32
    %c0_i32_1 = arith.constant 0 : i32
    return %c0_i32, %c0_i32_0 : i32, i32
  }
  func.func @transform_5(%arg0: i32) -> (i32, i32) {
    %c0_i32 = arith.constant 0 : i32
    %c0_i32_0 = arith.constant 0 : i32
    %c0_i32_1 = arith.constant 0 : i32
    return %c0_i32, %c0_i32_0 : i32, i32
  }
  func.func @transform_6(%arg0: i32) -> (i32, i32) {
    %c0_i32 = arith.constant 0 : i32
    %c0_i32_0 = arith.constant 0 : i32
    %c0_i32_1 = arith.constant 0 : i32
    return %c0_i32, %c0_i32_0 : i32, i32
  }
  func.func @transform_7(%arg0: i32) -> (i32, i32) {
    %c0_i32 = arith.constant 0 : i32
    %c0_i32_0 = arith.constant 0 : i32
    %c0_i32_1 = arith.constant 0 : i32
    return %c0_i32, %c0_i32_0 : i32, i32
  }
  func.func @transform_8(%arg0: i32) -> (i32, i32) {
    %c0_i32 = arith.constant 0 : i32
    %c0_i32_0 = arith.constant 0 : i32
    return %arg0, %c0_i32 : i32, i32
  }
}

</mosaic_0001>

<bundles_post_ra>
// kernel: tpu_custom_call.1
= control target key start
LH: loop header
LB: loop body
LE: loop exit
PB: predicated region body
PF: predicated region fallthrough
CT: control target
= control target key end

     0   :  { %s3525_s0 = inlined_call_operand.hbm [shape: f32[4,128], index: 0, kind: input, shape index: {}]   ;;  %s3526_s1 = inlined_call_operand.hbm [shape: f32[16,128], index: 1, kind: input, shape index: {}]   ;;  %s3527_s2 = inlined_call_operand.vmem [shape: f32[4,128], index: 2, kind: input, shape index: {}]   ;;  %s3528_s3 = inlined_call_operand.hbm [shape: f32[512,128], index: 3, kind: input, shape index: {}]   ;;  %s3529_s4 = inlined_call_operand.hbm [shape: f32[128,256], index: 4, kind: input, shape index: {}]   ;;  %s3530_s5 = inlined_call_operand.vmem [shape: f32[1,256], index: 5, kind: input, shape index: {}]   ;;  %s3531_s6 = inlined_call_operand.hbm [shape: f32[128,128], index: 6, kind: input, shape index: {}]   ;;  %s3532_s7 = inlined_call_operand.vmem [shape: f32[1,128], index: 7, kind: input, shape index: {}]   ;;  %s3533_s8 = inlined_call_operand.hbm [shape: f32[32,128], index: 8, kind: output, shape index: {}]  }
   0x1   :  { %3541 = sst [smem:[#allocation18_spill]] %s3525_s0 }
   0x2   :  { %3542 = sst [smem:[#allocation19_spill]] %s3526_s1 }
   0x3   :  { %13 = vsyncpa [#allocation3], 0 }
   0x4   :  { %14 = vsyncpa [#allocation6], 0 }
   0x5   :  { %15 = vsyncpa [#allocation10], 0 }
   0x6   :  { %16 = vsyncpa [#allocation4], 0 }
   0x7   :  { %18 = vsyncpa [#allocation4 + $0x1], 0  ;;  %s2831_s27 = smov 0   ;;  %s2833_s28 = smov 0  }
   0x8   :  { %s2835_s29 = smov 0   ;;  %s2837_s30 = smov 0  }
   0x9 LB: > { %s2852_s9 = sadd.s32 4294967295, %s2767_s30   ;;  %s2010_s10 = sadd.s32 4294967294, %s2767_s30   ;;  %s2767_s30 = sphi %s2837_s30, %s3570_s30   ;;  %s2763_s29 = sphi %s2835_s29, %s3569_s29   ;;  %s2759_s28 = sphi %s2833_s28, %s3568_s28   ;;  %s2755_s27 = sphi %s2831_s27, %s3567_s27  }
   0xa   : > { %p107_p0 = scmp.ne.s32.totalorder %s2759_s28, %s2755_s27  ;;  %p3534_p1 = scmp.eq.s32.totalorder %s2852_s9, 0 }
   0xb   : > { %p221_p3 = scmp.eq.s32.totalorder %s2010_s10, 1  ;;  %p2011_p5 = scmp.ge.s32.totalorder %s2767_s30, 1 }
   0xc   : > { %p2861_p4 = por %p3534_p1, %p107_p0  ;;  %p228_p7 = scmp.lt.s32.totalorder %s2767_s30, 3 }
   0xd   : > { %p2866_p6 = por %p221_p3, %p107_p0  ;;  %s2769_s14 = smov [#allocation2]  }
   0xe   : > { %s3543_s11 = scalar_select %p2861_p4, 1, 0 }
   0xf   : > { %s3544_s12 = scalar_select %p2866_p6, 1, 0 }
  0x10   : > { %p2871_p8 = pnand %p2011_p5, %p228_p7  ;;  %s241_s15 = sshll.u32 %s2769_s14, 4  ;;  %s242_s15 = int_to_ptr.vmem [resolvable:$true] %s241_s15 }
  0x11   : > { %s2770_s16 = smov [#allocation5]   ;;  %s2771_s19 = smov [#allocation8]  }
  0x12   : > { %s3545_s13 = scalar_select %p2871_p8, 1, 0 }
  0x13   : > { %p2441_p10 = pneg %p2871_p8  ;;  %s251_s17 = sshll.u32 %s2770_s16, 4  ;;  %s2884_s17 = int_to_ptr.vmem [resolvable:$true] %s251_s17 }
  0x14   : > { %s2886_s20 = sshll.u32 %s2771_s19, 4  ;;  %s3547_s0 = sld [smem:[#allocation18_spill]]  ;;  %s268_s20 = int_to_ptr.vmem [resolvable:$true] %s2886_s20 }
  0x15   : > { %p2880_p11 = pnand %p2441_p10, %p3534_p1 }
  0x17   : > { %p2896_p13 = pneg %p2880_p11 }
  0x1a   : > { %s2543_s23 = scalar_lea.hbm %s3547_s0, 64 }
  0x1b   : > { %p2544_p12 = scmp.ne.s32.totalorder %s3547_s0, %s2543_s23  ;;  %p2550_p5 = scmp.lt.u32.totalorder %s2543_s23, %s3547_s0 }
  0x1d   : > { %p2546_p0 = pnand %p2896_p13, %p2544_p12 }
  0x1f   : > { %p2547_p3 = pneg %p2546_p0 }
  0x21   : > { %p2552_p7 = pnand %p2550_p5, %p2547_p3 }
  0x23   : > { %2555 = shalt.err (!%p2552_p7)
}
  0x24   : > { %s2556_s16 = scalar_lea.vmem %s242_s15, 64  ;;  %p2564_p2 = scmp.lt.s32.totalorder %s242_s15, %s242_s15 }
  0x25   : > { %p2557_p10 = scmp.ne.s32.totalorder %s242_s15, %s2556_s16  ;;  %p2565_p6 = scmp.lt.s32.totalorder %s2556_s16, %s2556_s16 }
  0x27   : > { %p2559_p9 = pnand %p2557_p10, %p2896_p13  ;;  %p2566_p4 = por %p2565_p6, %p2564_p2 }
  0x29   : > { %p2560_p1 = pneg %p2559_p9 }
  0x2b   : > { %p2567_p8 = pnand %p2566_p4, %p2560_p1 }
  0x2d   : > { %2570 = shalt.err (!%p2567_p8)
}
  0x2e   : > { %2444 = dma.hbm_to_vmem [thread:$0]  (!%p2880_p11), %s3547_s0, 64, %s242_s15, [#allocation3]  }
  0x2f   : > { %s3549_s1 = sld [smem:[#allocation19_spill]] }
  0x35   : > { %s2571_s24 = scalar_lea.hbm %s3549_s1, 256 }
  0x36   : > { %p2572_p9 = scmp.ne.s32.totalorder %s3549_s1, %s2571_s24  ;;  %p2578_p1 = scmp.lt.u32.totalorder %s2571_s24, %s3549_s1 }
  0x38   : > { %p2574_p12 = pnand %p2572_p9, %p2896_p13 }
  0x3a   : > { %p2575_p2 = pneg %p2574_p12 }
  0x3c   : > { %p2580_p4 = pnand %p2578_p1, %p2575_p2 }
  0x3e   : > { %2583 = shalt.err (!%p2580_p4)
}
  0x3f   : > { %s2584_s15 = scalar_lea.vmem %s2884_s17, 256  ;;  %p2592_p3 = scmp.lt.s32.totalorder %s2884_s17, %s2884_s17 }
  0x40   : > { %p2585_p6 = scmp.ne.s32.totalorder %s2884_s17, %s2584_s15  ;;  %p2593_p5 = scmp.lt.s32.totalorder %s2584_s15, %s2584_s15 }
  0x42   : > { %p2587_p8 = pnand %p2585_p6, %p2896_p13  ;;  %p2594_p7 = por %p2593_p5, %p2592_p3 }
  0x44   : > { %p2588_p0 = pneg %p2587_p8 }
  0x46   : > { %p2595_p10 = pnand %p2594_p7, %p2588_p0 }
  0x48   : > { %2598 = shalt.err (!%p2595_p10)
}
  0x49   : > { %s3537_s19 = smov 128   ;;  %s3539_s21 = smov 8  }
  0x4a   : > { %2447 = dma.hbm_to_vmem [thread:$0]  (!%p2880_p11), %s3549_s1, 256, %s2884_s17, [#allocation6], %s3537_s19, %s3537_s19, %s3539_s21  }
  0x4b   : > { %s2599_s10 = scalar_lea.hbm %s3529_s4, 4096 }
  0x4c   : > { %p2600_p9 = scmp.ne.s32.totalorder %s3529_s4, %s2599_s10  ;;  %p2606_p1 = scmp.lt.u32.totalorder %s2599_s10, %s3529_s4 }
  0x4e   : > { %p2602_p12 = pnand %p2600_p9, %p2896_p13 }
  0x50   : > { %p2603_p2 = pneg %p2602_p12 }
  0x52   : > { %p2608_p4 = pnand %p2606_p1, %p2603_p2 }
  0x54   : > { %2611 = shalt.err (!%p2608_p4)
}
  0x55   : > { %s2612_s22 = scalar_lea.vmem %s268_s20, 4096  ;;  %p2620_p3 = scmp.lt.s32.totalorder %s268_s20, %s268_s20 }
  0x56   : > { %p2613_p6 = scmp.ne.s32.totalorder %s268_s20, %s2612_s22  ;;  %p2621_p5 = scmp.lt.s32.totalorder %s2612_s22, %s2612_s22 }
  0x58   : > { %p2615_p8 = pnand %p2613_p6, %p2896_p13  ;;  %p2622_p7 = por %p2621_p5, %p2620_p3 }
  0x5a   : > { %p2616_p0 = pneg %p2615_p8 }
  0x5c   : > { %p2623_p10 = pnand %p2622_p7, %p2616_p0 }
  0x5e   : > { %2626 = shalt.err (!%p2623_p10)
}
  0x5f   : > { %s2774_s17 = smov 256   ;;  %s2775_s23 = smov 16  }
  0x60   : > { %2450 = dma.hbm_to_vmem [thread:$0]  (!%p2880_p11), %s3529_s4, 4096, %s268_s20, [#allocation6], %s2774_s17, %s2774_s17, %s2775_s23  }
  0x61   : > { %s2776_s25 = smov [#allocation9]   ;;  %s2627_s15 = scalar_lea.hbm %s3531_s6, 2048 }
  0x62   : > { %s283_s10 = sshll.u32 %s2776_s25, 4  ;;  %p2628_p9 = scmp.ne.s32.totalorder %s3531_s6, %s2627_s15  ;;  %s284_s10 = int_to_ptr.vmem [resolvable:$true] %s283_s10 }
  0x63   : > { %p2634_p1 = scmp.lt.u32.totalorder %s2627_s15, %s3531_s6 }
  0x64   : > { %p2630_p12 = pnand %p2628_p9, %p2896_p13 }
  0x66   : > { %p2631_p2 = pneg %p2630_p12 }
  0x68   : > { %p2636_p4 = pnand %p2634_p1, %p2631_p2 }
  0x6a   : > { %2639 = shalt.err (!%p2636_p4)
}
  0x6b   : > { %s2640_s20 = scalar_lea.vmem %s284_s10, 2048  ;;  %p2648_p3 = scmp.lt.s32.totalorder %s284_s10, %s284_s10 }
  0x6c   : > { %p2641_p6 = scmp.ne.s32.totalorder %s284_s10, %s2640_s20  ;;  %p2649_p5 = scmp.lt.s32.totalorder %s2640_s20, %s2640_s20 }
  0x6e   : > { %p2643_p8 = pnand %p2641_p6, %p2896_p13  ;;  %p2650_p7 = por %p2649_p5, %p2648_p3 }
  0x70   : > { %p2644_p0 = pneg %p2643_p8 }
  0x72   : > { %p2651_p10 = pnand %p2650_p7, %p2644_p0 }
  0x74   : > { %2654 = shalt.err (!%p2651_p10)
}
  0x75   : > { %s3550_s19 = smov 8   ;;  %s3551_s17 = smov 128  }
  0x76   : > { %2453 = dma.hbm_to_vmem [thread:$0]  (!%p2880_p11), %s3531_s6, 2048, %s284_s10, [#allocation10], %s3551_s17, %s3551_s17, %s3550_s19  }
  0x77   : > { %s2979_s18 = sadd.s32 1, %s2767_s30   ;;  %s94_s26 = sadd.s32 1, %s2763_s29 }
  0x78   : > { %s91_s23 = ssub.s32 %s2767_s30, %s2979_s18  ;;  %p101_p13 = scmp.ne.s32.totalorder %s2763_s29, %s2759_s28 }
  0x79   : > { %p92_p9 = scmp.eq.s32.totalorder %s91_s23, 0  ;;  %p102_p12 = scmp.eq.s32.totalorder %s2767_s30, 0 }
  0x7a   : > { %p3552_p2 = scmp.eq.s32.totalorder %s2852_s9, 1  ;;  %p2466_p4 = scmp.lt.s32.totalorder %s2767_s30, 2 }
  0x7b   : > { %s2995_s24 = scalar_select %p92_p9, %s2763_s29, %s94_s26  }
  0x7c   : > { %p2989_p1 = por %p3552_p2, %p101_p13  ;;  %p103_p6 = por %p102_p12, %p101_p13 }
  0x7d   : > { %s300_s25 = sand.u32 1, %s2767_s30   ;;  %s302_s14 = sand.u32 1, %s2763_s29  }
  0x7e   : > { %s2017_s10 = sshll.u32 %s302_s14, 8  ;;  %s2054_s16 = sshll.u32 %s2767_s30, 12 }
  0x7f   : > { %s3003_s20 = scalar_lea.hbm %s3528_s3, %s2054_s16  ;;  %s304_s1 = scalar_lea.vmem [#allocation7], %s2017_s10 }
  0x80   : > { %s311_s21 = sshll.u32 %s304_s1, 4  ;;  %p3005_p11 = pnand %p2466_p4, %p103_p6  ;;  %s3009_s21 = int_to_ptr.vmem [resolvable:$true] %s311_s21 }
  0x81   : > { %s3011_s26 = scalar_lea.sflag [#allocation3], %s300_s25  ;;  %s2655_s14 = scalar_lea.hbm %s3003_s20, 4096 }
  0x82   : > { %p2656_p8 = scmp.ne.s32.totalorder %s3003_s20, %s2655_s14  ;;  %p2657_p0 = pneg %p3005_p11 }
  0x83   : > { %s2660_s15 = scalar_lea.hbm %s3528_s3, 8192  ;;  %p2661_p7 = scmp.lt.u32.totalorder %s3003_s20, %s3528_s3 }
  0x84   : > { %p2658_p3 = pnand %p2657_p0, %p2656_p8  ;;  %p2662_p10 = scmp.lt.u32.totalorder %s2660_s15, %s2655_s14 }
  0x85   : > { %p2664_p9 = scmp.lt.u32.totalorder %s2655_s14, %s3003_s20 }
  0x86   : > { %p2659_p5 = pneg %p2658_p3  ;;  %p2663_p13 = por %p2662_p10, %p2661_p7 }
  0x88   : > { %p2665_p12 = por %p2664_p9, %p2663_p13 }
  0x8a   : > { %p2666_p2 = pnand %p2665_p12, %p2659_p5 }
  0x8c   : > { %2669 = shalt.err (!%p2666_p2)
}
  0x8d   : > { %s2670_s25 = scalar_lea.vmem %s3009_s21, 4096  ;;  %s2777_s10 = smov [#allocation7]  }
  0x8e   : > { %p2671_p4 = scmp.ne.s32.totalorder %s3009_s21, %s2670_s25  ;;  %s2675_s16 = sshll.u32 %s2777_s10, 4  ;;  %s2676_s16 = int_to_ptr.vmem [resolvable:$false] %s2675_s16 }
  0x8f   : > { %s2677_s22 = scalar_lea.vmem %s2676_s16, 8192  ;;  %p2678_p3 = scmp.lt.s32.totalorder %s3009_s21, %s2676_s16 }
  0x90   : > { %p2673_p6 = pnand %p2671_p4, %p2657_p0  ;;  %p2679_p7 = scmp.lt.s32.totalorder %s2677_s22, %s2670_s25 }
  0x92   : > { %p2674_p8 = pneg %p2673_p6  ;;  %p2680_p10 = por %p2679_p7, %p2678_p3 }
  0x94   : > { %p2681_p13 = pnand %p2680_p10, %p2674_p8 }
  0x96   : > { %2684 = shalt.err (!%p2681_p13)
}
  0x97   : > { %2457 = dma.hbm_to_vmem [thread:$0]  (!%p3005_p11), %s3003_s20, 4096, %s3009_s21, %s3011_s26, %s3551_s17, %s3551_s17, %s3550_s19  }
  0x98   : > { %p3555_p0 = scmp.ne.s32.totalorder %s3545_s13, 0 }
  0x99   : > { %p3556_p5 = scmp.eq.s32.totalorder (!%p3555_p0), %s2852_s9, 0 }
  0x9a   : > { %323 = sbr.rel (%p3555_p0) target bundleno = 1492 (0x5d4), region = 52 }
  0xa1   : > { %2730 = dma.done.wait (%p3556_p5), [#allocation3], 64   ;;  %p3557_p9 = pmov %p3556_p5 }
  0xa2   : > { %p3558_p12 = pmov %p3556_p5 }
  0xa3   : > { %2732 = vsyncadd (%p3557_p9), [#allocation3], 4294967232 }
  0xa4   : > { %2734 = dma.done.wait (%p3558_p12), [#allocation6], 256   ;;  %p3559_p2 = pmov %p3556_p5 }
  0xa5   : > { %s333_s23 = sand.u32 1, %s2852_s9   ;;  %s3054_s19 = sand.u32 1, %s2759_s28  }
  0xa6   : > { %2736 = vsyncadd (%p3559_p2), [#allocation6], 4294967040  ;;  %s2023_s13 = sshll.u32 %s3054_s19, 8  ;;  %s334_s17 = scalar_lea.sflag [#allocation3], %s333_s23 }
  0xa7   : > { %s3057_s20 = scalar_lea.vmem [#allocation7], %s2023_s13  ;;  %p3560_p11 = scmp.ne.s32.totalorder %s3543_s11, 0 }
  0xa9   : > { %2738 = dma.done.wait (%p3560_p11), %s334_s17, 4096  }
  0xaa   : > { %2740 = vsyncadd (%p3560_p11), %s334_s17, 4294963200  ;;  %p3561_p4 = pmov %p3559_p2 }
  0xab   : > { %p3562_p6 = pmov %p3559_p2 }
  0xac   : > { %2742 = dma.done.wait (%p3561_p4), [#allocation6], 4096  }
  0xad   : > { %2744 = vsyncadd (%p3562_p6), [#allocation6], 4294963200  ;;  %p3563_p8 = pmov %p3559_p2 }
  0xae   : > { %p3564_p3 = pmov %p3559_p2 }
  0xaf   : > { %2746 = dma.done.wait (%p3563_p8), [#allocation10], 2048  }
  0xb0   : > { %2748 = vsyncadd (%p3564_p3), [#allocation10], 4294965248  ;;  %v2778_v0 = vmov 0.0   ;;  %v413_v1 = vld [vmem:[#allocation8 + $0x8] sm:$0xff]  ;;  %v415_v2 = vld [vmem:[#allocation8 + $0x18] sm:$0xff]  ;;  %vm812_vm0 = vcmask 1043456  }
  0xb1   : > { %520 = vmatprep.mubr.f32.mxu0 %v2778_v0  ;;  %v412_v3 = vld [vmem:[#allocation8] sm:$0xff]  ;;  %v2261_v4 = vpack.c.bf16 %v415_v2, %v413_v1  ;;  %v414_v5 = vld [vmem:[#allocation8 + $0x10] sm:$0xff]  ;;  %v417_v6 = vld [vmem:[#allocation8 + $0x28] sm:$0xff]  ;;  %s2779_s26 = smov 64   ;;  %vm1303_vm1 = vcmask 523264   ;;  %s2026_s10 = sshll.u32 %s3054_s19, 4 }
  0xb2   : > { %v419_v7 = vld [vmem:[#allocation8 + $0x38] sm:$0xff]  ;;  %v2263_v8 = vpack.c.bf16 %v414_v5, %v412_v3  ;;  %v416_v10 = vld [vmem:[#allocation8 + $0x20] sm:$0xff]  ;;  %v418_v11 = vld [vmem:[#allocation8 + $0x30] sm:$0xff]  ;;  %s377_s16 = scalar_lea.vmem [#allocation11], %s2026_s10  ;;  %s2055_s23 = sshll.u32 %s2852_s9, 8 }
  0xb3   : > { %v2265_v9 = vpack.c.bf16 %v419_v7, %v417_v6  ;;  %v421_v12 = vld [vmem:[#allocation8 + $0x48] sm:$0xff]  ;;  %2262 = vmatprep.subr.bf16.mxu0 %v2261_v4  ;;  %v423_v13 = vld [vmem:[#allocation8 + $0x58] sm:$0xff]  ;;  %v2267_v14 = vpack.c.bf16 %v418_v11, %v416_v10  ;;  %v420_v16 = vld [vmem:[#allocation8 + $0x40] sm:$0xff]  ;;  %s1899_s22 = sshll.u32 %s377_s16, 4  ;;  %s1886_s11 = scalar_lea.sflag [#allocation4], %s3054_s19  ;;  %s3476_s22 = int_to_ptr.vmem [resolvable:$true] %s1899_s22 }
  0xb4   : > { %2264 = vmatpush1.bf16.msra.mxu0 %v2263_v8  ;;  %v2269_v15 = vpack.c.bf16 %v423_v13, %v421_v12  ;;  %v422_v17 = vld [vmem:[#allocation8 + $0x50] sm:$0xff]  ;;  %v425_v18 = vld [vmem:[#allocation8 + $0x68] sm:$0xff]  ;;  %v427_v19 = vld [vmem:[#allocation8 + $0x78] sm:$0xff]  ;;  %s2685_s21 = scalar_lea.vmem %s3476_s22, 256  ;;  %s2783_s9 = smov [#allocation11]  }
  0xb5   : > { %2266 = vmatprep.subr.bf16.mxu0 %v2265_v9  ;;  %v2271_v20 = vpack.c.bf16 %v422_v17, %v420_v16  ;;  %v2273_v21 = vpack.c.bf16 %v427_v19, %v425_v18  ;;  %v424_v22 = vld [vmem:[#allocation8 + $0x60] sm:$0xff]  ;;  %v426_v23 = vld [vmem:[#allocation8 + $0x70] sm:$0xff]  ;;  %v429_v24 = vld [vmem:[#allocation8 + $0x88] sm:$0xff]  ;;  %v446_v18 = vlaneseq  ;;  %p2686_p7 = scmp.ne.s32.totalorder %s3476_s22, %s2685_s21 }
  0xb6   : > { %v431_v25 = vld [vmem:[#allocation8 + $0x98] sm:$0xff]  ;;  %v2275_v26 = vpack.c.bf16 %v426_v23, %v424_v22  ;;  %v428_v28 = vld [vmem:[#allocation8 + $0x80] sm:$0xff]  ;;  %v430_v29 = vld [vmem:[#allocation8 + $0x90] sm:$0xff] }
  0xb7   : > { %v2277_v27 = vpack.c.bf16 %v431_v25, %v429_v24  ;;  %v433_v30 = vld [vmem:[#allocation8 + $0xa8] sm:$0xff]  ;;  %v435_v31 = vld [vmem:[#allocation8 + $0xb8] sm:$0xff]  ;;  %v2279_v32 = vpack.c.bf16 %v430_v29, %v428_v28  ;;  %v432_v34 = vld [vmem:[#allocation8 + $0xa0] sm:$0xff]  ;;  %v3135_v19 = vshrl.u32 %v446_v18, 7  ;;  %p2687_p10 = pnand %p2686_p7, %p2989_p1 }
  0xb8   : > { %2268 = vmatpush1.bf16.msra.mxu0 %v2267_v14  ;;  %v2281_v33 = vpack.c.bf16 %v435_v31, %v433_v30  ;;  %v434_v35 = vld [vmem:[#allocation8 + $0xb0] sm:$0xff]  ;;  %v437_v36 = vld [vmem:[#allocation8 + $0xc8] sm:$0xff]  ;;  %v439_v37 = vld [vmem:[#allocation8 + $0xd8] sm:$0xff] }
  0xb9   : > { %2270 = vmatprep.subr.bf16.mxu0 %v2269_v15  ;;  %v2283_v38 = vpack.c.bf16 %v434_v35, %v432_v34  ;;  %v2285_v39 = vpack.c.bf16 %v439_v37, %v437_v36  ;;  %v436_v40 = vld [vmem:[#allocation8 + $0xc0] sm:$0xff]  ;;  %v438_v41 = vld [vmem:[#allocation8 + $0xd0] sm:$0xff]  ;;  %v441_v42 = vld [vmem:[#allocation8 + $0xe8] sm:$0xff]  ;;  %v452_v22 = vsub.s32 1, %v3135_v19  ;;  %p2688_p13 = pneg %p2687_p10 }
  0xba   : > { %v443_v43 = vld [vmem:[#allocation8 + $0xf8] sm:$0xff]  ;;  %v2287_v44 = vpack.c.bf16 %v438_v41, %v436_v40  ;;  %v440_v46 = vld [vmem:[#allocation8 + $0xe0] sm:$0xff]  ;;  %v442_v47 = vld [vmem:[#allocation8 + $0xf0] sm:$0xff] }
  0xbb   : > { %v2289_v45 = vpack.c.bf16 %v443_v43, %v441_v42  ;;  %v2291_v48 = vpack.c.bf16 %v442_v47, %v440_v46  ;;  %v380_v49 = vld [vmem:[%s3057_s20] sm:$0xff]  ;;  %v381_v50 = vld [vmem:[%s3057_s20 + $0x8] sm:$0xff]  ;;  %v382_v51 = vld [vmem:[%s3057_s20 + $0x10] sm:$0xff] }
  0xbc   : > { %2272 = vmatpush1.bf16.msra.mxu0 %v2271_v20  ;;  %v383_v52 = vld [vmem:[%s3057_s20 + $0x18] sm:$0xff]  ;;  %v384_v53 = vld [vmem:[%s3057_s20 + $0x20] sm:$0xff]  ;;  %v385_v54 = vld [vmem:[%s3057_s20 + $0x28] sm:$0xff]  ;;  %v3138_v20 = vsub.s32 0, %v3135_v19 }
  0xbd   : > { %2274 = vmatprep.subr.bf16.mxu0 %v2273_v21  ;;  %v386_v55 = vld [vmem:[%s3057_s20 + $0x30] sm:$0xff]  ;;  %v387_v56 = vld [vmem:[%s3057_s20 + $0x38] sm:$0xff]  ;;  %v388_v57 = vld [vmem:[%s3057_s20 + $0x40] sm:$0xff] }
  0xbe   : > { %v389_v58 = vld [vmem:[%s3057_s20 + $0x48] sm:$0xff]  ;;  %v390_v59 = vld [vmem:[%s3057_s20 + $0x50] sm:$0xff]  ;;  %v391_v60 = vld [vmem:[%s3057_s20 + $0x58] sm:$0xff] }
  0xbf   : > { %v392_v61 = vld [vmem:[%s3057_s20 + $0x60] sm:$0xff]  ;;  %v393_v62 = vld [vmem:[%s3057_s20 + $0x68] sm:$0xff]  ;;  %v394_v63 = vld [vmem:[%s3057_s20 + $0x70] sm:$0xff] }
  0xc0   : > { %2276 = vmatpush1.bf16.msra.mxu0 %v2275_v26  ;;  %v395_v1 = vld [vmem:[%s3057_s20 + $0x78] sm:$0xff]  ;;  %v396_v2 = vld [vmem:[%s3057_s20 + $0x80] sm:$0xff]  ;;  %v397_v3 = vld [vmem:[%s3057_s20 + $0x88] sm:$0xff] }
  0xc1   : > { %2278 = vmatprep.subr.bf16.mxu0 %v2277_v27  ;;  %v398_v4 = vld [vmem:[%s3057_s20 + $0x90] sm:$0xff]  ;;  %v399_v5 = vld [vmem:[%s3057_s20 + $0x98] sm:$0xff]  ;;  %v400_v6 = vld [vmem:[%s3057_s20 + $0xa0] sm:$0xff] }
  0xc2   : > { %v401_v7 = vld [vmem:[%s3057_s20 + $0xa8] sm:$0xff]  ;;  %v402_v8 = vld [vmem:[%s3057_s20 + $0xb0] sm:$0xff]  ;;  %v403_v9 = vld [vmem:[%s3057_s20 + $0xb8] sm:$0xff] }
  0xc3   : > { %v404_v10 = vld [vmem:[%s3057_s20 + $0xc0] sm:$0xff]  ;;  %v405_v11 = vld [vmem:[%s3057_s20 + $0xc8] sm:$0xff]  ;;  %v406_v12 = vld [vmem:[%s3057_s20 + $0xd0] sm:$0xff] }
  0xc4   : > { %2280 = vmatpush1.bf16.msra.mxu0 %v2279_v32  ;;  %v407_v13 = vld [vmem:[%s3057_s20 + $0xd8] sm:$0xff]  ;;  %v408_v14 = vld [vmem:[%s3057_s20 + $0xe0] sm:$0xff]  ;;  %v409_v15 = vld [vmem:[%s3057_s20 + $0xe8] sm:$0xff] }
  0xc5   : > { %2282 = vmatprep.subr.bf16.mxu0 %v2281_v33  ;;  %v410_v16 = vld [vmem:[%s3057_s20 + $0xf0] sm:$0xff]  ;;  %v411_v17 = vld [vmem:[%s3057_s20 + $0xf8] sm:$0xff]  ;;  %v444_v21 = vld [vmem:[%s3530_s5] sm:$0x3]  ;;  %s3481_s20 = scalar_lea.hbm %s3533_s8, %s2055_s23 }
  0xc6   : > { %v3145_v24 = vrot.slane %v444_v21, %v3138_v20  ;;  %v3149_v26 = vld [vmem:[#allocation5] sm:$0xff] }
  0xc7   : > { %2088 = vmatprep.mubr.f32.mxu1 %v3149_v26 }
  0xc8   : > { %2284 = vmatpush1.bf16.msra.mxu0 %v2283_v38 }
  0xc9   : > { %2286 = vmatprep.subr.bf16.mxu0 %v2285_v39 }
  0xcc   : > { %2288 = vmatpush1.bf16.msra.mxu0 %v2287_v44 }
  0xcd   : > { %2290 = vmatprep.subr.bf16.mxu0 %v2289_v45 }
  0xd0   : > { %2292 = vmatpush1.bf16.msra.mxu0 %v2291_v48 }
  0xd3   : > { %521 = vmatmul.mubr.f32.vlgmr.msra.gmra.mrb[0].mxu0 %v380_v49 }
  0xd4   : > { %526 = vmatprep.mubr.f32.mxu0 %v2778_v0 }
  0xd7   : > { %527 = vmatmul.mubr.f32.gmra.mrb[2].mxu0 %v381_v50 }
  0xd8   : > { %532 = vmatprep.mubr.f32.mxu0 %v2778_v0 }
  0xdb   : > { %533 = vmatmul.mubr.f32.gmra.mrb[4].mxu0 %v382_v51 }
  0xdc   : > { %538 = vmatprep.mubr.f32.mxu0 %v2778_v0 }
  0xdf   : > { %539 = vmatmul.mubr.f32.gmra.mrb[6].mxu0 %v383_v52 }
  0xe0   : > { %544 = vmatprep.mubr.f32.mxu0 %v2778_v0 }
  0xe3   : > { %545 = vmatmul.mubr.f32.gmra.mrb[8].mxu0 %v384_v53 }
  0xe4   : > { %550 = vmatprep.mubr.f32.mxu0 %v2778_v0 }
  0xe7   : > { %551 = vmatmul.mubr.f32.gmra.mrb[10].mxu0 %v385_v54 }
  0xe8   : > { %556 = vmatprep.mubr.f32.mxu0 %v2778_v0 }
  0xeb   : > { %557 = vmatmul.mubr.f32.gmra.mrb[12].mxu0 %v386_v55 }
  0xec   : > { %562 = vmatprep.mubr.f32.mxu0 %v2778_v0 }
  0xef   : > { %563 = vmatmul.mubr.f32.gmra.mrb[14].mxu0 %v387_v56 }
  0xf0   : > { %568 = vmatprep.mubr.f32.mxu0 %v2778_v0 }
  0xf3   : > { %569 = vmatmul.mubr.f32.gmra.mrb[16].mxu0 %v388_v57 }
  0xf4   : > { %574 = vmatprep.mubr.f32.mxu0 %v2778_v0 }
  0xf7   : > { %575 = vmatmul.mubr.f32.gmra.mrb[18].mxu0 %v389_v58 }
  0xf8   : > { %580 = vmatprep.mubr.f32.mxu0 %v2778_v0 }
  0xfb   : > { %581 = vmatmul.mubr.f32.gmra.mrb[20].mxu0 %v390_v59 }
  0xfc   : > { %586 = vmatprep.mubr.f32.mxu0 %v2778_v0 }
  0xff   : > { %587 = vmatmul.mubr.f32.gmra.mrb[22].mxu0 %v391_v60 }
 0x100   : > { %592 = vmatprep.mubr.f32.mxu0 %v2778_v0 }
 0x103   : > { %593 = vmatmul.mubr.f32.gmra.mrb[24].mxu0 %v392_v61 }
 0x104   : > { %598 = vmatprep.mubr.f32.mxu0 %v2778_v0 }
 0x107   : > { %599 = vmatmul.mubr.f32.gmra.mrb[26].mxu0 %v393_v62 }
 0x108   : > { %604 = vmatprep.mubr.f32.mxu0 %v2778_v0 }
 0x10b   : > { %605 = vmatmul.mubr.f32.gmra.mrb[28].mxu0 %v394_v63 }
 0x10c   : > { %610 = vmatprep.mubr.f32.mxu0 %v2778_v0 }
 0x10f   : > { %611 = vmatmul.mubr.f32.gmra.mrb[30].mxu0 %v395_v1 }
 0x110   : > { %616 = vmatprep.mubr.f32.mxu0 %v2778_v0 }
 0x113   : > { %617 = vmatmul.mubr.f32.gmra.mrb[32].mxu0 %v396_v2 }
 0x114   : > { %622 = vmatprep.mubr.f32.mxu0 %v2778_v0 }
 0x117   : > { %623 = vmatmul.mubr.f32.gmra.mrb[34].mxu0 %v397_v3 }
 0x118   : > { %628 = vmatprep.mubr.f32.mxu0 %v2778_v0 }
 0x11b   : > { %629 = vmatmul.mubr.f32.gmra.mrb[36].mxu0 %v398_v4 }
 0x11c   : > { %634 = vmatprep.mubr.f32.mxu0 %v2778_v0 }
 0x11f   : > { %635 = vmatmul.mubr.f32.gmra.mrb[38].mxu0 %v399_v5 }
 0x120   : > { %640 = vmatprep.mubr.f32.mxu0 %v2778_v0 }
 0x123   : > { %641 = vmatmul.mubr.f32.gmra.mrb[40].mxu0 %v400_v6 }
 0x124   : > { %646 = vmatprep.mubr.f32.mxu0 %v2778_v0 }
 0x127   : > { %647 = vmatmul.mubr.f32.gmra.mrb[42].mxu0 %v401_v7 }
 0x128   : > { %652 = vmatprep.mubr.f32.mxu0 %v2778_v0 }
 0x12b   : > { %653 = vmatmul.mubr.f32.gmra.mrb[44].mxu0 %v402_v8 }
 0x12c   : > { %658 = vmatprep.mubr.f32.mxu0 %v2778_v0 }
 0x12f   : > { %659 = vmatmul.mubr.f32.gmra.mrb[46].mxu0 %v403_v9 }
 0x130   : > { %664 = vmatprep.mubr.f32.mxu0 %v2778_v0 }
 0x133   : > { %665 = vmatmul.mubr.f32.gmra.mrb[48].mxu0 %v404_v10 }
 0x134   : > { %670 = vmatprep.mubr.f32.mxu0 %v2778_v0 }
 0x137   : > { %671 = vmatmul.mubr.f32.gmra.mrb[50].mxu0 %v405_v11 }
 0x138   : > { %676 = vmatprep.mubr.f32.mxu0 %v2778_v0 }
 0x13b   : > { %677 = vmatmul.mubr.f32.gmra.mrb[52].mxu0 %v406_v12 }
 0x13c   : > { %682 = vmatprep.mubr.f32.mxu0 %v2778_v0 }
 0x13f   : > { %683 = vmatmul.mubr.f32.gmra.mrb[54].mxu0 %v407_v13 }
 0x140   : > { %688 = vmatprep.mubr.f32.mxu0 %v2778_v0 }
 0x143   : > { %689 = vmatmul.mubr.f32.gmra.mrb[56].mxu0 %v408_v14 }
 0x144   : > { %694 = vmatprep.mubr.f32.mxu0 %v2778_v0 }
 0x147   : > { %695 = vmatmul.mubr.f32.gmra.mrb[58].mxu0 %v409_v15 }
 0x148   : > { %700 = vmatprep.mubr.f32.mxu0 %v2778_v0 }
 0x14b   : > { %701 = vmatmul.mubr.f32.gmra.mrb[60].mxu0 %v410_v16 }
 0x14c   : > { %706 = vmatprep.mubr.f32.mxu0 %v2778_v0  ;;  %v3147_v0 = vrot.slane %v444_v21, %v452_v22 }
 0x14f   : > { %707 = vmatmul.mubr.f32.gmra.mrb[62].mxu0 %v411_v17 }
 0x1a6   : > { %v522_v23 = vpop.f32.mrb[0].mxu0 }
 0x1a7   : > { %v524_v25 = vpop.f32.mrb[1].mxu0  ;;  %v3153_v28 = vadd.f32 %v522_v23, %v3145_v24 }
 0x1a8   : > { %v525_v31 = vadd.f32 %v524_v25, %v3147_v0 }
 0x1aa   : > { %v528_v27 = vpop.f32.mrb[2].mxu0 }
 0x1ab   : > { %v3156_v29 = vadd.f32 %v528_v27, %v3145_v24  ;;  %v530_v30 = vpop.f32.mrb[3].mxu0 }
 0x1ac   : > { %v531_v32 = vadd.f32 %v530_v30, %v3147_v0 }
 0x1ad   : > { %v2295_v33 = vpack.c.bf16 %v3156_v29, %v3153_v28 }
 0x1ae   : > { %v3162_v34 = vpack.c.bf16 %v531_v32, %v525_v31  ;;  %v534_v35 = vpop.f32.mrb[4].mxu0 }
 0x1af   : > { %v536_v36 = vpop.f32.mrb[5].mxu0  ;;  %v3165_v38 = vadd.f32 %v534_v35, %v3145_v24 }
 0x1b0   : > { %v537_v41 = vadd.f32 %v536_v36, %v3147_v0 }
 0x1b2   : > { %v540_v37 = vpop.f32.mrb[6].mxu0 }
 0x1b3   : > { %v3168_v39 = vadd.f32 %v540_v37, %v3145_v24  ;;  %v542_v40 = vpop.f32.mrb[7].mxu0 }
 0x1b4   : > { %v543_v42 = vadd.f32 %v542_v40, %v3147_v0 }
 0x1b5   : > { %v2299_v43 = vpack.c.bf16 %v3168_v39, %v3165_v38 }
 0x1b6   : > { %v3174_v44 = vpack.c.bf16 %v543_v42, %v537_v41  ;;  %v546_v45 = vpop.f32.mrb[8].mxu0 }
 0x1b7   : > { %v548_v46 = vpop.f32.mrb[9].mxu0  ;;  %v3177_v48 = vadd.f32 %v546_v45, %v3145_v24 }
 0x1b8   : > { %v549_v51 = vadd.f32 %v548_v46, %v3147_v0 }
 0x1ba   : > { %v552_v47 = vpop.f32.mrb[10].mxu0 }
 0x1bb   : > { %v3180_v49 = vadd.f32 %v552_v47, %v3145_v24  ;;  %v554_v50 = vpop.f32.mrb[11].mxu0 }
 0x1bc   : > { %v555_v52 = vadd.f32 %v554_v50, %v3147_v0 }
 0x1bd   : > { %v2303_v53 = vpack.c.bf16 %v3180_v49, %v3177_v48 }
 0x1be   : > { %v3186_v54 = vpack.c.bf16 %v555_v52, %v549_v51  ;;  %v558_v55 = vpop.f32.mrb[12].mxu0 }
 0x1bf   : > { %v560_v56 = vpop.f32.mrb[13].mxu0  ;;  %v3189_v58 = vadd.f32 %v558_v55, %v3145_v24 }
 0x1c0   : > { %v561_v61 = vadd.f32 %v560_v56, %v3147_v0 }
 0x1c2   : > { %v564_v57 = vpop.f32.mrb[14].mxu0 }
 0x1c3   : > { %v3192_v59 = vadd.f32 %v564_v57, %v3145_v24  ;;  %v566_v60 = vpop.f32.mrb[15].mxu0 }
 0x1c4   : > { %v567_v62 = vadd.f32 %v566_v60, %v3147_v0 }
 0x1c5   : > { %v2307_v63 = vpack.c.bf16 %v3192_v59, %v3189_v58 }
 0x1c6   : > { %v3198_v1 = vpack.c.bf16 %v567_v62, %v561_v61  ;;  %v570_v2 = vpop.f32.mrb[16].mxu0 }
 0x1c7   : > { %v572_v3 = vpop.f32.mrb[17].mxu0  ;;  %v3201_v5 = vadd.f32 %v570_v2, %v3145_v24 }
 0x1c8   : > { %v573_v8 = vadd.f32 %v572_v3, %v3147_v0 }
 0x1ca   : > { %v576_v4 = vpop.f32.mrb[18].mxu0 }
 0x1cb   : > { %v3204_v6 = vadd.f32 %v576_v4, %v3145_v24  ;;  %v578_v7 = vpop.f32.mrb[19].mxu0 }
 0x1cc   : > { %v579_v9 = vadd.f32 %v578_v7, %v3147_v0 }
 0x1cd   : > { %v2311_v10 = vpack.c.bf16 %v3204_v6, %v3201_v5 }
 0x1ce   : > { %v3210_v11 = vpack.c.bf16 %v579_v9, %v573_v8  ;;  %v582_v12 = vpop.f32.mrb[20].mxu0 }
 0x1cf   : > { %v584_v13 = vpop.f32.mrb[21].mxu0  ;;  %v3213_v15 = vadd.f32 %v582_v12, %v3145_v24 }
 0x1d0   : > { %v585_v18 = vadd.f32 %v584_v13, %v3147_v0 }
 0x1d2   : > { %v588_v14 = vpop.f32.mrb[22].mxu0 }
 0x1d3   : > { %v3216_v16 = vadd.f32 %v588_v14, %v3145_v24  ;;  %v590_v17 = vpop.f32.mrb[23].mxu0 }
 0x1d4   : > { %v591_v21 = vadd.f32 %v590_v17, %v3147_v0 }
 0x1d5   : > { %v2315_v22 = vpack.c.bf16 %v3216_v16, %v3213_v15 }
 0x1d6   : > { %v3222_v23 = vpack.c.bf16 %v591_v21, %v585_v18  ;;  %v594_v25 = vpop.f32.mrb[24].mxu0 }
 0x1d7   : > { %v596_v27 = vpop.f32.mrb[25].mxu0  ;;  %v3225_v31 = vadd.f32 %v594_v25, %v3145_v24 }
 0x1d8   : > { %v597_v36 = vadd.f32 %v596_v27, %v3147_v0 }
 0x1da   : > { %v600_v30 = vpop.f32.mrb[26].mxu0 }
 0x1db   : > { %v3228_v32 = vadd.f32 %v600_v30, %v3145_v24  ;;  %v602_v35 = vpop.f32.mrb[27].mxu0 }
 0x1dc   : > { %v603_v37 = vadd.f32 %v602_v35, %v3147_v0 }
 0x1dd   : > { %v2319_v40 = vpack.c.bf16 %v3228_v32, %v3225_v31  ;;  %v714_v31 = vld [vmem:[#allocation5 + $0x8] sm:$0xff] }
 0x1de   : > { %v3234_v41 = vpack.c.bf16 %v603_v37, %v597_v36  ;;  %v606_v42 = vpop.f32.mrb[28].mxu0 }
 0x1df   : > { %v608_v45 = vpop.f32.mrb[29].mxu0  ;;  %v3237_v47 = vadd.f32 %v606_v42, %v3145_v24 }
 0x1e0   : > { %v609_v52 = vadd.f32 %v608_v45, %v3147_v0 }
 0x1e2   : > { %v612_v46 = vpop.f32.mrb[30].mxu0 }
 0x1e3   : > { %v3240_v50 = vadd.f32 %v612_v46, %v3145_v24  ;;  %v614_v51 = vpop.f32.mrb[31].mxu0 }
 0x1e4   : > { %v615_v55 = vadd.f32 %v614_v51, %v3147_v0 }
 0x1e5   : > { %v2323_v56 = vpack.c.bf16 %v3240_v50, %v3237_v47 }
 0x1e6   : > { %v3246_v57 = vpack.c.bf16 %v615_v55, %v609_v52  ;;  %v618_v60 = vpop.f32.mrb[32].mxu0 }
 0x1e7   : > { %v620_v61 = vpop.f32.mrb[33].mxu0  ;;  %v619_v2 = vadd.f32 %v618_v60, %v3145_v24 }
 0x1e8   : > { %v621_v7 = vadd.f32 %v620_v61, %v3147_v0 }
 0x1ea   : > { %v624_v62 = vpop.f32.mrb[34].mxu0 }
 0x1eb   : > { %v625_v3 = vadd.f32 %v624_v62, %v3145_v24  ;;  %v626_v4 = vpop.f32.mrb[35].mxu0 }
 0x1ec   : > { %v627_v8 = vadd.f32 %v626_v4, %v3147_v0 }
 0x1ed   : > { %v2293_v9 = vpack.c.bf16 %v625_v3, %v619_v2 }
 0x1ee   : > { %v3252_v12 = vpack.c.bf16 %v627_v8, %v621_v7  ;;  %v630_v13 = vpop.f32.mrb[36].mxu0 }
 0x1ef   : > { %v632_v14 = vpop.f32.mrb[37].mxu0  ;;  %2294 = vmatprep.subr.bf16.mxu1 %v2293_v9  ;;  %v631_v18 = vadd.f32 %v630_v13, %v3145_v24 }
 0x1f0   : > { %2296 = vmatpush3.bf16.xpose.msra.mxu1 %v2295_v33  ;;  %v633_v27 = vadd.f32 %v632_v14, %v3147_v0 }
 0x1f2   : > { %v636_v17 = vpop.f32.mrb[38].mxu0 }
 0x1f3   : > { %v637_v21 = vadd.f32 %v636_v17, %v3145_v24  ;;  %v638_v25 = vpop.f32.mrb[39].mxu0 }
 0x1f4   : > { %v639_v30 = vadd.f32 %v638_v25, %v3147_v0 }
 0x1f5   : > { %v2297_v35 = vpack.c.bf16 %v637_v21, %v631_v18 }
 0x1f6   : > { %v3261_v36 = vpack.c.bf16 %v639_v30, %v633_v27  ;;  %v642_v37 = vpop.f32.mrb[40].mxu0 }
 0x1f7   : > { %v644_v42 = vpop.f32.mrb[41].mxu0  ;;  %2298 = vmatprep.subr.bf16.mxu1 %v2297_v35  ;;  %v643_v29 = vadd.f32 %v642_v37, %v3145_v24 }
 0x1f8   : > { %2300 = vmatpush3.bf16.xpose.msra.mxu1 %v2299_v43  ;;  %v645_v46 = vadd.f32 %v644_v42, %v3147_v0 }
 0x1fa   : > { %v648_v28 = vpop.f32.mrb[42].mxu0 }
 0x1fb   : > { %v649_v33 = vadd.f32 %v648_v28, %v3145_v24  ;;  %v650_v45 = vpop.f32.mrb[43].mxu0 }
 0x1fc   : > { %v651_v51 = vadd.f32 %v650_v45, %v3147_v0 }
 0x1fd   : > { %v2301_v52 = vpack.c.bf16 %v649_v33, %v643_v29 }
 0x1fe   : > { %v3270_v55 = vpack.c.bf16 %v651_v51, %v645_v46  ;;  %v654_v60 = vpop.f32.mrb[44].mxu0 }
 0x1ff   : > { %v656_v61 = vpop.f32.mrb[45].mxu0  ;;  %2302 = vmatprep.subr.bf16.mxu1 %v2301_v52  ;;  %v655_v39 = vadd.f32 %v654_v60, %v3145_v24 }
 0x200   : > { %2304 = vmatpush3.bf16.xpose.msra.mxu1 %v2303_v53  ;;  %v657_v2 = vadd.f32 %v656_v61, %v3147_v0 }
 0x202   : > { %v660_v38 = vpop.f32.mrb[46].mxu0 }
 0x203   : > { %v661_v43 = vadd.f32 %v660_v38, %v3145_v24  ;;  %v662_v62 = vpop.f32.mrb[47].mxu0 }
 0x204   : > { %v663_v3 = vadd.f32 %v662_v62, %v3147_v0 }
 0x205   : > { %v2305_v4 = vpack.c.bf16 %v661_v43, %v655_v39 }
 0x206   : > { %v3279_v7 = vpack.c.bf16 %v663_v3, %v657_v2  ;;  %v666_v8 = vpop.f32.mrb[48].mxu0 }
 0x207   : > { %v668_v9 = vpop.f32.mrb[49].mxu0  ;;  %2306 = vmatprep.subr.bf16.mxu1 %v2305_v4  ;;  %v667_v49 = vadd.f32 %v666_v8, %v3145_v24 }
 0x208   : > { %2308 = vmatpush3.bf16.xpose.msra.mxu1 %v2307_v63  ;;  %v669_v14 = vadd.f32 %v668_v9, %v3147_v0 }
 0x20a   : > { %v672_v48 = vpop.f32.mrb[50].mxu0 }
 0x20b   : > { %v673_v53 = vadd.f32 %v672_v48, %v3145_v24  ;;  %v674_v13 = vpop.f32.mrb[51].mxu0 }
 0x20c   : > { %v675_v17 = vadd.f32 %v674_v13, %v3147_v0 }
 0x20d   : > { %v2309_v18 = vpack.c.bf16 %v673_v53, %v667_v49 }
 0x20e   : > { %v3288_v21 = vpack.c.bf16 %v675_v17, %v669_v14  ;;  %v678_v25 = vpop.f32.mrb[52].mxu0 }
 0x20f   : > { %v680_v27 = vpop.f32.mrb[53].mxu0  ;;  %2310 = vmatprep.subr.bf16.mxu1 %v2309_v18  ;;  %v679_v59 = vadd.f32 %v678_v25, %v3145_v24 }
 0x210   : > { %2312 = vmatpush3.bf16.xpose.msra.mxu1 %v2311_v10  ;;  %v681_v35 = vadd.f32 %v680_v27, %v3147_v0 }
 0x212   : > { %v684_v58 = vpop.f32.mrb[54].mxu0 }
 0x213   : > { %v685_v63 = vadd.f32 %v684_v58, %v3145_v24  ;;  %v686_v30 = vpop.f32.mrb[55].mxu0 }
 0x214   : > { %v687_v37 = vadd.f32 %v686_v30, %v3147_v0 }
 0x215   : > { %v2313_v42 = vpack.c.bf16 %v685_v63, %v679_v59 }
 0x216   : > { %v3297_v28 = vpack.c.bf16 %v687_v37, %v681_v35  ;;  %v690_v29 = vpop.f32.mrb[56].mxu0 }
 0x217   : > { %v692_v33 = vpop.f32.mrb[57].mxu0  ;;  %2314 = vmatprep.subr.bf16.mxu1 %v2313_v42  ;;  %v691_v6 = vadd.f32 %v690_v29, %v3145_v24 }
 0x218   : > { %2316 = vmatpush3.bf16.xpose.msra.mxu1 %v2315_v22  ;;  %v693_v46 = vadd.f32 %v692_v33, %v3147_v0 }
 0x21a   : > { %v696_v5 = vpop.f32.mrb[58].mxu0 }
 0x21b   : > { %v697_v10 = vadd.f32 %v696_v5, %v3145_v24  ;;  %v698_v45 = vpop.f32.mrb[59].mxu0 }
 0x21c   : > { %v699_v51 = vadd.f32 %v698_v45, %v3147_v0 }
 0x21d   : > { %v2317_v52 = vpack.c.bf16 %v697_v10, %v691_v6 }
 0x21e   : > { %v3306_v60 = vpack.c.bf16 %v699_v51, %v693_v46  ;;  %v702_v61 = vpop.f32.mrb[60].mxu0 }
 0x21f   : > { %v704_v38 = vpop.f32.mrb[61].mxu0  ;;  %2318 = vmatprep.subr.bf16.mxu1 %v2317_v52  ;;  %v703_v16 = vadd.f32 %v702_v61, %v3145_v24 }
 0x220   : > { %2320 = vmatpush3.bf16.xpose.msra.mxu1 %v2319_v40  ;;  %v705_v43 = vadd.f32 %v704_v38, %v3147_v0 }
 0x222   : > { %v708_v15 = vpop.f32.mrb[62].mxu0 }
 0x223   : > { %v709_v22 = vadd.f32 %v708_v15, %v3145_v24  ;;  %v710_v39 = vpop.f32.mrb[63].mxu0 }
 0x224   : > { %v711_v62 = vadd.f32 %v710_v39, %v3147_v0 }
 0x225   : > { %v2321_v2 = vpack.c.bf16 %v709_v22, %v703_v16 }
 0x226   : > { %v3315_v3 = vpack.c.bf16 %v711_v62, %v705_v43 }
 0x227   : > { %2322 = vmatprep.subr.bf16.mxu1 %v2321_v2 }
 0x228   : > { %2324 = vmatpush3.bf16.xpose.msra.mxu1 %v2323_v56 }
 0x229   : > { %2326 = vmatprep.subr.bf16.mxu1 %v3162_v34 }
 0x22f   : > { %2089 = vmatmul.mubr.f32.vlgmr.msra.gmra.mrb[0].mxu1 %v3149_v26 }
 0x230   : > { %2328 = vmatpush3.bf16.msra.mxu1 %v3162_v34  ;;  %2090 = vmatprep.mubr.f32.mxu1 %v714_v31 }
 0x231   : > { %2330 = vmatprep.subr.bf16.mxu1 %v3174_v44 }
 0x233   : > { %2091 = vmatmul.mubr.f32.gmra.mrb[2].mxu1 %v714_v31 }
 0x234   : > { %2332 = vmatpush3.bf16.msra.mxu1 %v3174_v44 }
 0x235   : > { %2334 = vmatprep.subr.bf16.mxu1 %v3186_v54 }
 0x238   : > { %2336 = vmatpush3.bf16.msra.mxu1 %v3186_v54 }
 0x239   : > { %2338 = vmatprep.subr.bf16.mxu1 %v3198_v1 }
 0x23c   : > { %2340 = vmatpush3.bf16.msra.mxu1 %v3198_v1 }
 0x23d   : > { %2342 = vmatprep.subr.bf16.mxu1 %v3210_v11 }
 0x302   : > { %v781_v24 = vpop.f32.mrb[0].mxu1 }
 0x303   : > { %v783_v0 = vpop.f32.mrb[1].mxu1 }
 0x304   : > { %v3330_v26 = vcombine.low %v781_v24, %v783_v0  ;;  %v3332_v34 = vcombine.high %v781_v24, %v783_v0  ;;  %v2027_v32 = vcombine.low %v783_v0, %v783_v0  ;;  %v2028_v40 = vcombine.high %v783_v0, %v783_v0 }
 0x306   : > { %v813_v44 = vsel %vm812_vm0, %v3330_v26, -inf  ;;  %v820_v54 = vsel %vm812_vm0, %v2027_v32, -inf  ;;  %v827_v47 = vsel %vm812_vm0, %v3332_v34, -inf  ;;  %v834_v1 = vsel %vm812_vm0, %v2028_v40, -inf  ;;  %v787_v50 = vpop.f32.mrb[2].mxu1 }
 0x307   : > { %v814_v56 = vrot.slane %v813_v44, 4  ;;  %v821_v4 = vrot.slane %v820_v54, 4  ;;  %v828_v8 = vrot.slane %v827_v47, 4  ;;  %v835_v9 = vrot.slane %v834_v1, 4  ;;  %v789_v48 = vpop.f32.mrb[3].mxu1 }
 0x308   : > { %v798_v49 = vcombine.low %v787_v50, %v789_v48  ;;  %v799_v53 = vcombine.high %v787_v50, %v789_v48  ;;  %v2029_v13 = vcombine.low %v789_v48, %v789_v48  ;;  %v2030_v14 = vcombine.high %v789_v48, %v789_v48 }
 0x309   : > { %v815_v17 = vmax.f32 %v813_v44, %v814_v56  ;;  %v822_v18 = vmax.f32 %v820_v54, %v821_v4  ;;  %v829_v25 = vmax.f32 %v827_v47, %v828_v8  ;;  %v836_v27 = vmax.f32 %v834_v1, %v835_v9 }
 0x30a   : > { %v841_v58 = vsel %vm812_vm0, %v798_v49, -inf  ;;  %v848_v59 = vsel %vm812_vm0, %v2029_v13, -inf  ;;  %v855_v63 = vsel %vm812_vm0, %v799_v53, -inf  ;;  %v862_v30 = vsel %vm812_vm0, %v2030_v14, -inf }
 0x30b   : > { %v816_v35 = vrot.slane %v815_v17, 2  ;;  %v823_v37 = vrot.slane %v822_v18, 2  ;;  %v830_v42 = vrot.slane %v829_v25, 2  ;;  %v837_v29 = vrot.slane %v836_v27, 2 }
 0x30c   : > { %v842_v33 = vrot.slane %v841_v58, 4  ;;  %v849_v5 = vrot.slane %v848_v59, 4  ;;  %v856_v6 = vrot.slane %v855_v63, 4  ;;  %v863_v10 = vrot.slane %v862_v30, 4 }
 0x30d   : > { %v817_v45 = vmax.f32 %v815_v17, %v816_v35  ;;  %v824_v46 = vmax.f32 %v822_v18, %v823_v37  ;;  %v831_v51 = vmax.f32 %v829_v25, %v830_v42  ;;  %v838_v52 = vmax.f32 %v836_v27, %v837_v29 }
 0x30e   : > { %v843_v61 = vmax.f32 %v841_v58, %v842_v33  ;;  %v850_v38 = vmax.f32 %v848_v59, %v849_v5  ;;  %v857_v15 = vmax.f32 %v855_v63, %v856_v6  ;;  %v864_v16 = vmax.f32 %v862_v30, %v863_v10 }
 0x30f   : > { %v818_v22 = vrot.slane %v817_v45, 1  ;;  %v825_v39 = vrot.slane %v824_v46, 1  ;;  %v832_v43 = vrot.slane %v831_v51, 1  ;;  %v839_v62 = vrot.slane %v838_v52, 1 }
 0x310   : > { %v844_v2 = vrot.slane %v843_v61, 2  ;;  %v851_v31 = vrot.slane %v850_v38, 2  ;;  %v858_v24 = vrot.slane %v857_v15, 2  ;;  %v865_v0 = vrot.slane %v864_v16, 2 }
 0x311   : > { %v819_v32 = vmax.f32 %v817_v45, %v818_v22  ;;  %v826_v40 = vmax.f32 %v824_v46, %v825_v39  ;;  %v833_v44 = vmax.f32 %v831_v51, %v832_v43  ;;  %v840_v54 = vmax.f32 %v838_v52, %v839_v62 }
 0x312   : > { %v845_v47 = vmax.f32 %v843_v61, %v844_v2  ;;  %v852_v1 = vmax.f32 %v850_v38, %v851_v31  ;;  %v859_v50 = vmax.f32 %v857_v15, %v858_v24  ;;  %v866_v56 = vmax.f32 %v864_v16, %v865_v0 }
 0x313   : > { %v877_v4 = vcombine.low %v819_v32, %v826_v40  ;;  %v878_v8 = vcombine.low %v833_v44, %v840_v54 }
 0x314   : > { %v846_v9 = vrot.slane %v845_v47, 1  ;;  %v853_v48 = vrot.slane %v852_v1, 1  ;;  %v860_v13 = vrot.slane %v859_v50, 1  ;;  %v867_v14 = vrot.slane %v866_v56, 1 }
 0x315   : > { %v885_v17 = vsub.f32 %v3330_v26, %v877_v4  ;;  %v886_v18 = vsub.f32 %v3332_v34, %v878_v8 }
 0x316   : > { %v847_v25 = vmax.f32 %v845_v47, %v846_v9  ;;  %v854_v27 = vmax.f32 %v852_v1, %v853_v48  ;;  %v861_v58 = vmax.f32 %v859_v50, %v860_v13  ;;  %v868_v59 = vmax.f32 %v866_v56, %v867_v14 }
 0x317   : > { %v889_v63 = vmul.f32 1.442695, %v885_v17  ;;  %v891_v30 = vmul.f32 1.442695, %v886_v18 }
 0x318   : > { %v879_v35 = vcombine.low %v847_v25, %v854_v27  ;;  %v880_v37 = vcombine.low %v861_v58, %v868_v59 }
 0x319   : > { %2519 = vpow2.f32 %v889_v63 }
 0x31a   : > { %2521 = vpow2.f32 %v891_v30  ;;  %v887_v42 = vsub.f32 %v798_v49, %v879_v35  ;;  %v888_v29 = vsub.f32 %v799_v53, %v880_v37 }
 0x31c   : > { %v893_v33 = vmul.f32 1.442695, %v887_v42  ;;  %v895_v5 = vmul.f32 1.442695, %v888_v29 }
 0x31e   : > { %2523 = vpow2.f32 %v893_v33 }
 0x31f   : > { %2525 = vpow2.f32 %v895_v5 }
 0x323   : > { %v3346_v6 = vpop.eup %2519 }
 0x324   : > { %v3348_v26 = vpop.eup %2521  ;;  %v901_v34 = vcombine.high %v3346_v6, %v3346_v6  ;;  %v909_v10 = vsel %vm812_vm0, %v3346_v6, 0.0 }
 0x325   : > { %v910_v45 = vrot.slane %v909_v10, 4  ;;  %v902_v46 = vcombine.high %v3348_v26, %v3348_v26  ;;  %v923_v49 = vsel %vm812_vm0, %v3348_v26, 0.0 }
 0x326   : > { %v916_v53 = vsel %vm812_vm0, %v901_v34, 0.0  ;;  %v924_v51 = vrot.slane %v923_v49, 4 }
 0x327   : > { %v911_v52 = vadd.f32 %v910_v45, %v909_v10  ;;  %v917_v61 = vrot.slane %v916_v53, 4  ;;  %v930_v38 = vsel %vm812_vm0, %v902_v46, 0.0 }
 0x328   : > { %v3360_v15 = vpop.eup %2523  ;;  %v925_v16 = vadd.f32 %v924_v51, %v923_v49  ;;  %v931_v22 = vrot.slane %v930_v38, 4 }
 0x329   : > { %v3362_v39 = vpop.eup %2525  ;;  %v912_v43 = vrot.slane %v911_v52, 2  ;;  %v918_v62 = vadd.f32 %v917_v61, %v916_v53  ;;  %v903_v2 = vcombine.high %v3360_v15, %v3360_v15  ;;  %v937_v31 = vsel %vm812_vm0, %v3360_v15, 0.0 }
 0x32a   : > { %v926_v24 = vrot.slane %v925_v16, 2  ;;  %v932_v0 = vadd.f32 %v931_v22, %v930_v38  ;;  %v938_v32 = vrot.slane %v937_v31, 4  ;;  %v904_v40 = vcombine.high %v3362_v39, %v3362_v39 }
 0x32b   : > { %v913_v44 = vadd.f32 %v912_v43, %v911_v52  ;;  %v919_v54 = vrot.slane %v918_v62, 2  ;;  %v944_v47 = vsel %vm812_vm0, %v903_v2, 0.0  ;;  %v951_v1 = vsel %vm812_vm0, %v3362_v39, 0.0 }
 0x32c   : > { %v927_v50 = vadd.f32 %v926_v24, %v925_v16  ;;  %v933_v56 = vrot.slane %v932_v0, 2  ;;  %v939_v4 = vadd.f32 %v938_v32, %v937_v31  ;;  %v945_v8 = vrot.slane %v944_v47, 4 }
 0x32d   : > { %v914_v9 = vrot.slane %v913_v44, 1  ;;  %v920_v48 = vadd.f32 %v919_v54, %v918_v62  ;;  %v952_v13 = vrot.slane %v951_v1, 4  ;;  %v958_v14 = vsel %vm812_vm0, %v904_v40, 0.0 }
 0x32e   : > { %v928_v17 = vrot.slane %v927_v50, 1  ;;  %v934_v18 = vadd.f32 %v933_v56, %v932_v0  ;;  %v940_v25 = vrot.slane %v939_v4, 2  ;;  %v946_v27 = vadd.f32 %v945_v8, %v944_v47 }
 0x32f   : > { %v915_v58 = vadd.f32 %v914_v9, %v913_v44  ;;  %v921_v59 = vrot.slane %v920_v48, 1  ;;  %v953_v63 = vadd.f32 %v952_v13, %v951_v1  ;;  %v959_v30 = vrot.slane %v958_v14, 4  ;;  %v1757_v13 = vld [vmem:[#allocation9] sm:$0xff] }
 0x330   : > { %v935_v35 = vrot.slane %v934_v18, 1  ;;  %v941_v37 = vadd.f32 %v940_v25, %v939_v4  ;;  %v947_v42 = vrot.slane %v946_v27, 2  ;;  %v929_v33 = vadd.f32 %v928_v17, %v927_v50 }
 0x331   : > { %v922_v29 = vadd.f32 %v921_v59, %v920_v48  ;;  %v954_v5 = vrot.slane %v953_v63, 2  ;;  %v960_v34 = vadd.f32 %v959_v30, %v958_v14  ;;  %2527 = vrcp.f32 %v915_v58  ;;  %v1759_v14 = vld [vmem:[#allocation9 + $0x10] sm:$0xff]  ;;  %v1762_v58 = vld [vmem:[#allocation9 + $0x28] sm:$0xff]  ;;  %v1765_v30 = vld [vmem:[#allocation9 + $0x40] sm:$0xff] }
 0x332   : > { %v936_v10 = vadd.f32 %v935_v35, %v934_v18  ;;  %v942_v45 = vrot.slane %v941_v37, 1  ;;  %v948_v46 = vadd.f32 %v947_v42, %v946_v27  ;;  %v1760_v18 = vld [vmem:[#allocation9 + $0x18] sm:$0xff]  ;;  %v1761_v27 = vld [vmem:[#allocation9 + $0x20] sm:$0xff]  ;;  %v1763_v59 = vld [vmem:[#allocation9 + $0x30] sm:$0xff] }
 0x333   : > { %2529 = vrcp.f32 %v922_v29  ;;  %v955_v49 = vadd.f32 %v954_v5, %v953_v63  ;;  %v961_v53 = vrot.slane %v960_v34, 2  ;;  %v2393_v25 = vpack.c.bf16 %v1760_v18, %v1759_v14 }
 0x334   : > { %2531 = vrcp.f32 %v936_v10  ;;  %v943_v51 = vadd.f32 %v942_v45, %v941_v37  ;;  %v949_v52 = vrot.slane %v948_v46, 1  ;;  %v2780_v37 = vmov 1983009808  }
 0x335   : > { %2533 = vrcp.f32 %v929_v33  ;;  %v956_v61 = vrot.slane %v955_v49, 1  ;;  %v962_v38 = vadd.f32 %v961_v53, %v960_v34  ;;  %v1027_v42 = vunpack.c.l.s4 %v2780_v37 }
 0x336   : > { %v950_v16 = vadd.f32 %v949_v52, %v948_v46  ;;  %2535 = vrcp.f32 %v943_v51  ;;  %v2781_v29 = vmov 1934713408  }
 0x337   : > { %v957_v22 = vadd.f32 %v956_v61, %v955_v49  ;;  %v963_v43 = vrot.slane %v962_v38, 1  ;;  %v1044_v33 = vunpack.c.l.s4 %v2781_v29  ;;  %v1028_v34 = vunpack.c.0.s8 %v1027_v42 }
 0x338   : > { %2537 = vrcp.f32 %v950_v16 }
 0x339   : > { %v964_v62 = vadd.f32 %v963_v43, %v962_v38  ;;  %2539 = vrcp.f32 %v957_v22  ;;  %v1045_v10 = vunpack.c.0.s8 %v1044_v33  ;;  %v3379_v53 = vsub.s32 %v1028_v34, %v3135_v19 }
 0x33b   : > { %2541 = vrcp.f32 %v964_v62  ;;  %v2528_v2 = vpop.eup %2527  ;;  %v3382_v38 = vsub.s32 %v1045_v10, %v3135_v19 }
 0x33d   : > { %v2530_v31 = vpop.eup %2529 }
 0x33e   : > { %v2532_v24 = vpop.eup %2531  ;;  %v981_v0 = vcombine.low %v2528_v2, %v2530_v31 }
 0x33f   : > { %v2534_v32 = vpop.eup %2533 }
 0x340   : > { %v989_v40 = vmul.f32 %v3346_v6, %v981_v0  ;;  %v982_v44 = vcombine.low %v2534_v32, %v2532_v24  ;;  %v2536_v54 = vpop.eup %2535  ;;  %v1758_v6 = vld [vmem:[#allocation9 + $0x8] sm:$0xff] }
 0x341   : > { %v2389_v17 = vpack.c.bf16 %v1758_v6, %v1757_v13 }
 0x342   : > { %v2538_v47 = vpop.eup %2537  ;;  %1005 = vrot.lane.b32.xlu0 %v989_v40, %s2779_s26  ;;  %v990_v56 = vmul.f32 %v3348_v26, %v982_v44  ;;  %v2397_v26 = vpack.c.bf16 %v1762_v58, %v1761_v27  ;;  %v997_v5 = vrot.slane %v989_v40, 4 }
 0x343   : > { %v983_v1 = vcombine.low %v2536_v54, %v2538_v47  ;;  %v2540_v50 = vpop.eup %2539  ;;  %2390 = vmatprep.subr.bf16.mxu0 %v2389_v17 }
 0x344   : > { %2392 = vmatpush3.bf16.msra.mxu0 %v2389_v17  ;;  %v1025_v46 = vcombine.low %v989_v40, %v997_v5  ;;  %v998_v49 = vrot.slane %v990_v56, 4 }
 0x345   : > { %v2542_v4 = vpop.eup %2541  ;;  %v991_v8 = vmul.f32 %v3360_v15, %v983_v1  ;;  %2394 = vmatprep.subr.bf16.mxu0 %v2393_v25  ;;  %v1764_v15 = vld [vmem:[#allocation9 + $0x38] sm:$0xff] }
 0x346   : > { %1007 = vrot.lane.b32.xlu0 %v990_v56, %s2779_s26  ;;  %v984_v9 = vcombine.low %v2540_v50, %v2542_v4  ;;  %v2401_v63 = vpack.c.bf16 %v1764_v15, %v1763_v59  ;;  %v1032_v22 = vrot.slane %v1025_v46, %v3379_v53  ;;  %v1059_v62 = vcombine.low %v990_v56, %v998_v49 }
 0x347   : > { %1009 = vrot.lane.b32.xlu1 %v991_v8, %s2779_s26  ;;  %v999_v52 = vrot.slane %v991_v8, 4 }
 0x348   : > { %v992_v48 = vmul.f32 %v3362_v39, %v984_v9  ;;  %2396 = vmatpush3.bf16.msra.mxu0 %v2393_v25  ;;  %v1766_v39 = vld [vmem:[#allocation9 + $0x48] sm:$0xff]  ;;  %v1066_v4 = vrot.slane %v1059_v62, %v3379_v53 }
 0x349   : > { %2398 = vmatprep.subr.bf16.mxu0 %v2397_v26  ;;  %v2405_v35 = vpack.c.bf16 %v1766_v39, %v1765_v30  ;;  %v1093_v24 = vcombine.low %v991_v8, %v999_v52 }
 0x34a   : > { %v1000_v0 = vrot.slane %v992_v48, 4 }
 0x34b   : > { %1011 = vrot.lane.b32.xlu1 %v992_v48, %s2779_s26  ;;  %v1100_v56 = vrot.slane %v1093_v24, %v3379_v53  ;;  %s2689_s26 = sshll.u32 %s2783_s9, 4  ;;  %s2690_s26 = int_to_ptr.vmem [resolvable:$false] %s2689_s26 }
 0x34c   : > { %2400 = vmatpush3.bf16.msra.mxu0 %v2397_v26  ;;  %v1127_v8 = vcombine.low %v992_v48, %v1000_v0  ;;  %s2691_s14 = scalar_lea.vmem %s2690_s26, 512  ;;  %p2692_p0 = scmp.lt.s32.totalorder %s3476_s22, %s2690_s26 }
 0x34d   : > { %2402 = vmatprep.subr.bf16.mxu0 %v2401_v63  ;;  %p2693_p5 = scmp.lt.s32.totalorder %s2691_s14, %s2685_s21 }
 0x34e   : > { %v1134_v37 = vrot.slane %v1127_v8, %v3379_v53 }
 0x34f   : > { %p2694_p9 = por %p2693_p5, %p2692_p0 }
 0x350   : > { %2404 = vmatpush3.bf16.msra.mxu0 %v2401_v63 }
 0x351   : > { %2406 = vmatprep.subr.bf16.mxu0 %v2405_v35  ;;  %p2695_p12 = pnand %p2694_p9, %p2688_p13 }
 0x354   : > { %2408 = vmatpush3.bf16.msra.mxu0 %v2405_v35 }
 0x3b4   : > { %v1006_v45 = vpop.permute.xlu0 %1005 }
 0x3b5   : > { %v1013_v51 = vrot.slane %v1006_v45, 4 }
 0x3b7   : > { %v1033_v61 = vcombine.low %v1006_v45, %v1013_v51 }
 0x3b8   : > { %v1008_v16 = vpop.permute.xlu0 %1007 }
 0x3b9   : > { %v1040_v43 = vrot.slane %v1033_v61, %v3379_v53  ;;  %v1014_v2 = vrot.slane %v1008_v16, 4  ;;  %v1010_v31 = vpop.permute.xlu1 %1009 }
 0x3ba   : > { %v1015_v32 = vrot.slane %v1010_v31, 4 }
 0x3bb   : > { %v1041_v40 = vcombine.low %v1032_v22, %v1040_v43  ;;  %v1042_v44 = vcombine.high %v1032_v22, %v1040_v43  ;;  %v1067_v54 = vcombine.low %v1008_v16, %v1014_v2 }
 0x3bc   : > { %v1101_v47 = vcombine.low %v1010_v31, %v1015_v32 }
 0x3bd   : > { %v1049_v1 = vrot.slane %v1041_v40, %v3382_v38  ;;  %v1056_v50 = vrot.slane %v1042_v44, %v3382_v38  ;;  %v1074_v9 = vrot.slane %v1067_v54, %v3379_v53  ;;  %v1012_v13 = vpop.permute.xlu1 %1011 }
 0x3be   : > { %v1108_v6 = vrot.slane %v1101_v47, %v3379_v53  ;;  %v1016_v14 = vrot.slane %v1012_v13, 4 }
 0x3bf   : > { %v1161_v17 = vcombine.low %v1049_v1, %v1056_v50  ;;  %v2031_v18 = vcombine.high %v1049_v1, %v1056_v50  ;;  %v1075_v25 = vcombine.low %v1066_v4, %v1074_v9  ;;  %v1076_v27 = vcombine.high %v1066_v4, %v1074_v9 }
 0x3c0   : > { %v1109_v58 = vcombine.low %v1100_v56, %v1108_v6  ;;  %v1110_v26 = vcombine.high %v1100_v56, %v1108_v6  ;;  %v1135_v59 = vcombine.low %v1012_v13, %v1016_v14 }
 0x3c1   : > { %v1168_v15 = vrot.slane %v1161_v17, %v3379_v53  ;;  %v1176_v63 = vrot.slane %v2031_v18, %v3379_v53  ;;  %v1083_v30 = vrot.slane %v1075_v25, %v3382_v38  ;;  %v1090_v39 = vrot.slane %v1076_v27, %v3382_v38 }
 0x3c2   : > { %v1117_v35 = vrot.slane %v1109_v58, %v3382_v38  ;;  %v1124_v48 = vrot.slane %v1110_v26, %v3382_v38  ;;  %v1142_v42 = vrot.slane %v1135_v59, %v3379_v53 }
 0x3c3   : > { %v1195_v29 = vcombine.low %v1083_v30, %v1090_v39  ;;  %v2032_v33 = vcombine.high %v1083_v30, %v1090_v39  ;;  %v1177_v51 = vcombine.low %v1168_v15, %v1176_v63  ;;  %v1178_v52 = vcombine.high %v1168_v15, %v1176_v63 }
 0x3c4   : > { %v1229_v5 = vcombine.low %v1117_v35, %v1124_v48  ;;  %v2033_v34 = vcombine.high %v1117_v35, %v1124_v48  ;;  %v1143_v10 = vcombine.low %v1134_v37, %v1142_v42  ;;  %v1144_v45 = vcombine.high %v1134_v37, %v1142_v42 }
 0x3c5   : > { %v1202_v46 = vrot.slane %v1195_v29, %v3379_v53  ;;  %v1210_v49 = vrot.slane %v2032_v33, %v3379_v53  ;;  %v1185_v0 = vrot.slane %v1177_v51, %v3382_v38  ;;  %v1192_v40 = vrot.slane %v1178_v52, %v3382_v38 }
 0x3c6   : > { %v1236_v61 = vrot.slane %v1229_v5, %v3379_v53  ;;  %v1244_v16 = vrot.slane %v2033_v34, %v3379_v53  ;;  %v1151_v22 = vrot.slane %v1143_v10, %v3382_v38  ;;  %v1158_v43 = vrot.slane %v1144_v45, %v3382_v38 }
 0x3c7   : > { %v1211_v62 = vcombine.low %v1202_v46, %v1210_v49  ;;  %v1212_v2 = vcombine.high %v1202_v46, %v1210_v49 }
 0x3c8   : > { %v1263_v31 = vcombine.low %v1151_v22, %v1158_v43  ;;  %v2034_v24 = vcombine.high %v1151_v22, %v1158_v43  ;;  %v1245_v54 = vcombine.low %v1236_v61, %v1244_v16  ;;  %v1246_v47 = vcombine.high %v1236_v61, %v1244_v16 }
 0x3c9   : > { %v1219_v32 = vrot.slane %v1211_v62, %v3382_v38  ;;  %v1226_v44 = vrot.slane %v1212_v2, %v3382_v38 }
 0x3ca   : > { %v1270_v1 = vrot.slane %v1263_v31, %v3379_v53  ;;  %v1278_v50 = vrot.slane %v2034_v24, %v3379_v53  ;;  %v1253_v14 = vrot.slane %v1245_v54, %v3382_v38  ;;  %v1260_v18 = vrot.slane %v1246_v47, %v3382_v38 }
 0x3cb   : > { %v1301_v4 = vcombine.low %v1185_v0, %v1219_v32  ;;  %v2037_v9 = vcombine.high %v1185_v0, %v1219_v32  ;;  %v1472_v13 = vcombine.low %v1192_v40, %v1226_v44  ;;  %v2043_v56 = vcombine.high %v1192_v40, %v1226_v44 }
 0x3cc   : > { %v1279_v6 = vcombine.low %v1270_v1, %v1278_v50  ;;  %v1280_v8 = vcombine.high %v1270_v1, %v1278_v50 }
 0x3cd   : > { %2166 = vmatprep.mubr.msk.f32.mxu1 %vm1303_vm1, %v1301_v4 }
 0x3ce   : > { %v1287_v17 = vrot.slane %v1279_v6, %v3382_v38  ;;  %v1294_v25 = vrot.slane %v1280_v8, %v3382_v38  ;;  %v2047_v38 = vld.sshfl [vmem:[%s3527_s2] sm:$0x33 pattern:$0x75316420] }
 0x3cf   : > { %v1647_v15 = vcombine.high %v2047_v38, %v2047_v38 }
 0x3d0   : > { %v1302_v27 = vcombine.low %v1253_v14, %v1287_v17  ;;  %v2038_v58 = vcombine.high %v1253_v14, %v1287_v17  ;;  %v1473_v26 = vcombine.low %v1260_v18, %v1294_v25  ;;  %v2044_v53 = vcombine.high %v1260_v18, %v1294_v25 }
 0x3d2   : > { %2167 = vmatmul.mubr.msk.f32.vlgmr.msra.gmra.mrb[4].mxu1 %vm1303_vm1, %v1302_v27 }
 0x3d3   : > { %2344 = vmatpush3.bf16.msra.mxu1 %v3210_v11  ;;  %2185 = vmatprep.mubr.msk.f32.mxu1 %vm1303_vm1, %v2037_v9  ;;  %v1767_v11 = vld [vmem:[#allocation9 + $0x50] sm:$0xff] }
 0x3d4   : > { %2346 = vmatprep.subr.bf16.mxu1 %v3222_v23 }
 0x3d7   : > { %2348 = vmatpush3.bf16.msra.mxu1 %v3222_v23  ;;  %v1768_v23 = vld [vmem:[#allocation9 + $0x58] sm:$0xff] }
 0x3d8   : > { %2350 = vmatprep.subr.bf16.mxu1 %v3234_v41 }
 0x3db   : > { %2352 = vmatpush3.bf16.msra.mxu1 %v3234_v41  ;;  %v2409_v41 = vpack.c.bf16 %v1768_v23, %v1767_v11 }
 0x3dc   : > { %2354 = vmatprep.subr.bf16.mxu1 %v3246_v57 }
 0x3dd   : > { %2410 = vmatprep.subr.bf16.mxu0 %v2409_v41 }
 0x3de   : > { %2412 = vmatpush3.bf16.msra.mxu0 %v2409_v41 }
 0x3df   : > { %2356 = vmatpush3.bf16.msra.mxu1 %v3246_v57  ;;  %v1769_v57 = vld [vmem:[#allocation9 + $0x60] sm:$0xff] }
 0x3e0   : > { %2358 = vmatprep.subr.bf16.mxu1 %v3252_v12 }
 0x3e2   : > { %2186 = vmatmul.mubr.msk.f32.vlgmr.msra.gmra.mrb[6].mxu1 %vm1303_vm1, %v2038_v58 }
 0x3e3   : > { %2360 = vmatpush3.bf16.msra.mxu1 %v3252_v12  ;;  %2204 = vmatprep.mubr.msk.f32.mxu1 %vm1303_vm1, %v1472_v13  ;;  %v1770_v12 = vld [vmem:[#allocation9 + $0x68] sm:$0xff] }
 0x3e4   : > { %2362 = vmatprep.subr.bf16.mxu1 %v3261_v36  ;;  %v1752_v13 = vld [vmem:[#allocation2] sm:$0xf] }
 0x3e7   : > { %2364 = vmatpush3.bf16.msra.mxu1 %v3261_v36  ;;  %v2413_v36 = vpack.c.bf16 %v1770_v12, %v1769_v57 }
 0x3e8   : > { %2366 = vmatprep.subr.bf16.mxu1 %v3270_v55 }
 0x3e9   : > { %2414 = vmatprep.subr.bf16.mxu0 %v2413_v36 }
 0x3ea   : > { %2416 = vmatpush3.bf16.msra.mxu0 %v2413_v36 }
 0x3eb   : > { %2368 = vmatpush3.bf16.msra.mxu1 %v3270_v55  ;;  %v1771_v55 = vld [vmem:[#allocation9 + $0x70] sm:$0xff] }
 0x3ec   : > { %2370 = vmatprep.subr.bf16.mxu1 %v3279_v7 }
 0x3ef   : > { %2372 = vmatpush3.bf16.msra.mxu1 %v3279_v7  ;;  %v1772_v7 = vld [vmem:[#allocation9 + $0x78] sm:$0xff] }
 0x3f0   : > { %2374 = vmatprep.subr.bf16.mxu1 %v3288_v21 }
 0x3f2   : > { %2205 = vmatmul.mubr.msk.f32.vlgmr.msra.gmra.mrb[8].mxu1 %vm1303_vm1, %v1473_v26 }
 0x3f3   : > { %2376 = vmatpush3.bf16.msra.mxu1 %v3288_v21  ;;  %2223 = vmatprep.mubr.msk.f32.mxu1 %vm1303_vm1, %v2043_v56  ;;  %v2417_v21 = vpack.c.bf16 %v1772_v7, %v1771_v55 }
 0x3f4   : > { %2378 = vmatprep.subr.bf16.mxu1 %v3297_v28 }
 0x3f5   : > { %2418 = vmatprep.subr.bf16.mxu0 %v2417_v21 }
 0x3f6   : > { %2420 = vmatpush3.bf16.msra.mxu0 %v2417_v21 }
 0x3f7   : > { %2380 = vmatpush3.bf16.msra.mxu1 %v3297_v28  ;;  %v2782_v28 = vmov 1966171168  }
 0x3f8   : > { %2382 = vmatprep.subr.bf16.mxu1 %v3306_v60 }
 0x3fb   : > { %2384 = vmatpush3.bf16.msra.mxu1 %v3306_v60  ;;  %v1649_v60 = vunpack.c.l.s4 %v2782_v28 }
 0x3fc   : > { %2386 = vmatprep.subr.bf16.mxu1 %v3315_v3 }
 0x3ff   : > { %2388 = vmatpush3.bf16.msra.mxu1 %v3315_v3  ;;  %v1650_v3 = vunpack.c.0.s8 %v1649_v60 }
 0x401   : > { %v1653_v59 = vsub.s32 %v1650_v3, %v3135_v19 }
 0x402   : > { %2224 = vmatmul.mubr.msk.f32.vlgmr.msra.gmra.mrb[10].mxu1 %vm1303_vm1, %v2044_v53 }
 0x403   : > { %v1654_v63 = vrot.slane %v2047_v38, %v1653_v59  ;;  %v1661_v30 = vrot.slane %v1647_v15, %v1653_v59 }
 0x405   : > { %v1662_v39 = vcombine.high %v1654_v63, %v1654_v63  ;;  %v1663_v35 = vcombine.high %v1661_v30, %v1661_v30  ;;  %v1691_v48 = vrot.slane %v1654_v63, %v3138_v20  ;;  %v1695_v29 = vrot.slane %v1661_v30, %v3138_v20 }
 0x407   : > { %v1699_v42 = vrot.slane %v1662_v39, %v3138_v20  ;;  %v1703_v34 = vrot.slane %v1663_v35, %v3138_v20 }
 0x4a5   : > { %v2168_v37 = vpop.f32.mrb[4].mxu1 }
 0x4a6   : > { %v1374_v33 = vpop.f32.mrb[5].mxu1  ;;  %v1673_v5 = vcombine.high %v2168_v37, %v2168_v37  ;;  %v1710_v46 = vmul.f32 %v2168_v37, %v1699_v42 }
 0x4a7   : > { %v1672_v10 = vcombine.high %v1374_v33, %v1374_v33  ;;  %v1708_v45 = vmul.f32 %v1691_v48, %v1374_v33 }
 0x4a8   : > { %v1711_v49 = vmul.f32 %v1703_v34, %v1673_v5  ;;  %v1727_v16 = vsel %vm812_vm0, %v1710_v46, 0.0 }
 0x4a9   : > { %v1709_v19 = vmul.f32 %v1695_v29, %v1672_v10  ;;  %v1724_v51 = vsel %vm812_vm0, %v1708_v45, 0.0 }
 0x4aa   : > { %v1729_v43 = vsel %vm812_vm0, %v1711_v49, 0.0 }
 0x4ab   : > { %v1725_v52 = vsel %vm812_vm0, %v1709_v19, 0.0 }
 0x4ac   : > { %v1726_v61 = vadd.f32 %v1725_v52, %v1724_v51 }
 0x4ae   : > { %v1728_v22 = vadd.f32 %v1727_v16, %v1726_v61 }
 0x4b0   : > { %v1730_v62 = vadd.f32 %v1729_v43, %v1728_v22 }
 0x4b2   : > { %v1753_v6 = vadd.f32 %v1752_v13, %v1730_v62 }
 0x4b5   : > { %v2187_v2 = vpop.f32.mrb[6].mxu1 }
 0x4b6   : > { %v1459_v31 = vpop.f32.mrb[7].mxu1  ;;  %v1675_v24 = vcombine.high %v2187_v2, %v2187_v2  ;;  %v1714_v32 = vmul.f32 %v2187_v2, %v1699_v42 }
 0x4b7   : > { %v1674_v20 = vcombine.high %v1459_v31, %v1459_v31  ;;  %v1712_v0 = vmul.f32 %v1691_v48, %v1459_v31 }
 0x4b8   : > { %v1715_v44 = vmul.f32 %v1703_v34, %v1675_v24  ;;  %v1734_v50 = vsel %vm812_vm0, %v1714_v32, 0.0 }
 0x4b9   : > { %v1713_v40 = vmul.f32 %v1695_v29, %v1674_v20  ;;  %v1731_v54 = vsel %vm812_vm0, %v1712_v0, 0.0 }
 0x4ba   : > { %v1736_v9 = vsel %vm812_vm0, %v1715_v44, 0.0 }
 0x4bb   : > { %v1732_v47 = vsel %vm812_vm0, %v1713_v40, 0.0 }
 0x4bc   : > { %v1733_v1 = vadd.f32 %v1732_v47, %v1731_v54 }
 0x4be   : > { %v1735_v4 = vadd.f32 %v1734_v50, %v1733_v1 }
 0x4c0   : > { %v1737_v56 = vadd.f32 %v1736_v9, %v1735_v4 }
 0x4c2   : > { %v1754_v8 = vadd.f32 %v1752_v13, %v1737_v56 }
 0x4c4   : > { %v1784_v14 = vcombine.low %v1753_v6, %v1754_v8 }
 0x4c5   : > { %v2206_v17 = vpop.f32.mrb[8].mxu1 }
 0x4c6   : > { %v1544_v18 = vpop.f32.mrb[9].mxu1  ;;  %2258 = vmatprep.mubr.f32.mxu0 %v1784_v14  ;;  %v1677_v25 = vcombine.high %v2206_v17, %v2206_v17  ;;  %v1718_v26 = vmul.f32 %v2206_v17, %v1699_v42 }
 0x4c7   : > { %v1676_v27 = vcombine.high %v1544_v18, %v1544_v18  ;;  %v1716_v58 = vmul.f32 %v1691_v48, %v1544_v18 }
 0x4c8   : > { %v1719_v11 = vmul.f32 %v1703_v34, %v1677_v25  ;;  %v1741_v12 = vsel %vm812_vm0, %v1718_v26, 0.0 }
 0x4c9   : > { %v1717_v53 = vmul.f32 %v1695_v29, %v1676_v27  ;;  %v1738_v23 = vsel %vm812_vm0, %v1716_v58, 0.0 }
 0x4ca   : > { %v1743_v55 = vsel %vm812_vm0, %v1719_v11, 0.0 }
 0x4cb   : > { %v1739_v41 = vsel %vm812_vm0, %v1717_v53, 0.0 }
 0x4cc   : > { %v1740_v57 = vadd.f32 %v1739_v41, %v1738_v23 }
 0x4ce   : > { %v1742_v36 = vadd.f32 %v1741_v12, %v1740_v57 }
 0x4d0   : > { %v1744_v7 = vadd.f32 %v1743_v55, %v1742_v36 }
 0x4d2   : > { %v1755_v46 = vadd.f32 %v1752_v13, %v1744_v7 }
 0x4d5   : > { %v2225_v21 = vpop.f32.mrb[10].mxu1 }
 0x4d6   : > { %v1629_v28 = vpop.f32.mrb[11].mxu1  ;;  %v1679_v60 = vcombine.high %v2225_v21, %v2225_v21  ;;  %v1722_v59 = vmul.f32 %v2225_v21, %v1699_v42 }
 0x4d7   : > { %v1678_v3 = vcombine.high %v1629_v28, %v1629_v28  ;;  %v1720_v38 = vmul.f32 %v1691_v48, %v1629_v28  ;;  %v2048_v48 = vld [vmem:[%s3532_s7] ss:$0 sm:$0xff] }
 0x4d8   : > { %v1723_v63 = vmul.f32 %v1703_v34, %v1679_v60  ;;  %v1748_v37 = vsel %vm812_vm0, %v1722_v59, 0.0 }
 0x4d9   : > { %v1721_v15 = vmul.f32 %v1695_v29, %v1678_v3  ;;  %v1745_v30 = vsel %vm812_vm0, %v1720_v38, 0.0 }
 0x4da   : > { %v1750_v5 = vsel %vm812_vm0, %v1723_v63, 0.0 }
 0x4db   : > { %v1746_v39 = vsel %vm812_vm0, %v1721_v15, 0.0 }
 0x4dc   : > { %v1747_v35 = vadd.f32 %v1746_v39, %v1745_v30 }
 0x4de   : > { %v1749_v33 = vadd.f32 %v1748_v37, %v1747_v35 }
 0x4e0   : > { %v1751_v10 = vadd.f32 %v1750_v5, %v1749_v33 }
 0x4e2   : > { %v1756_v45 = vadd.f32 %v1752_v13, %v1751_v10 }
 0x4e4   : > { %v1785_v19 = vcombine.low %v1755_v46, %v1756_v45 }
 0x4e6   : > { %2259 = vmatmul.mubr.f32.vlgmr.msra.gmra.mrb[64].mxu0 %v1785_v19 }
 0x5b9   : > { %v2260_v42 = vpop.f32.mrb[64].mxu0 }
 0x5ba   : > { %v1860_v29 = vadd.f32 %v2260_v42, %v2048_v48  ;;  %v1854_v34 = vpop.f32.mrb[65].mxu0 }
 0x5bb   : > { %v1855_v49 = vadd.f32 %v2048_v48, %v1854_v34 }
 0x5bc   : > { %v1864_v51 = vmax.f32 %v1860_v29, 0.0 }
 0x5bd   : > { %v1863_v52 = vmax.f32 %v1855_v49, 0.0 }
 0x5be   : > { %v1868_v61 = vcombine.high %v1864_v51, %v1864_v51  ;;  %v1873_v22 = vadd.f32 %v1864_v51, %v1755_v46 }
 0x5bf   : > { %v1867_v16 = vcombine.high %v1863_v52, %v1863_v52  ;;  %v1871_v62 = vadd.f32 %v1863_v52, %v1753_v6 }
 0x5c0   : > { %v1874_v43 = vadd.f32 %v1868_v61, %v1756_v45 }
 0x5c1   : > { %v1872_v2 = vadd.f32 %v1867_v16, %v1754_v8 }
 0x5c2   : > { %v1880_v31 = vcombine.low %v1873_v22, %v1874_v43 }
 0x5c3   : > { %v1879_v24 = vcombine.low %v1871_v62, %v1872_v2 }
 0x5c4   : > { %1884 = vst [vmem:[%s377_s16 + $0x8] sm:$0xff] %v1880_v31 }
 0x5c5   : > { %1883 = vst [vmem:[%s377_s16] sm:$0xff] %v1879_v24 }
 0x5c6   : > { %2698 = shalt.err (!%p2695_p12)
}
 0x5c7   : > { %s2699_s15 = scalar_lea.hbm %s3481_s20, 256  ;;  %s2703_s10 = scalar_lea.hbm %s3533_s8, 512 }
 0x5c8   : > { %p2700_p2 = scmp.ne.s32.totalorder %s3481_s20, %s2699_s15  ;;  %p2704_p6 = scmp.lt.u32.totalorder %s3481_s20, %s3533_s8 }
 0x5c9   : > { %p2705_p8 = scmp.lt.u32.totalorder %s2703_s10, %s2699_s15  ;;  %p2707_p7 = scmp.lt.u32.totalorder %s2699_s15, %s3481_s20 }
 0x5ca   : > { %p2701_p11 = pnand %p2700_p2, %p2989_p1 }
 0x5cb   : > { %p2706_p3 = por %p2705_p8, %p2704_p6 }
 0x5cc   : > { %p2702_p4 = pneg %p2701_p11 }
 0x5cd   : > { %p2708_p10 = por %p2707_p7, %p2706_p3 }
 0x5cf   : > { %p2709_p13 = pnand %p2708_p10, %p2702_p4 }
 0x5d1   : > { %2712 = shalt.err (!%p2709_p13)
}
 0x5d2   : > { %s2784_s13 = smov 128   ;;  %s2785_s17 = smov 8  }
 0x5d3   : > { %2439 = dma.vmem_to_hbm [thread:$0]  (%p2989_p1), %s3476_s22, 256, %s3481_s20, %s1886_s11, %s2784_s13, %s2784_s13, %s2785_s17  }
 0x5d4 PF: > { %s1914_s21 = sand.u32 1, %s2755_s27   ;;  %p3565_p0 = scmp.ne.s32.totalorder %s3544_s12, 0 }
 0x5d5   : > { %p3566_p5 = scmp.ge.s32.totalorder %s2767_s30, 2  ;;  %s1915_s9 = scalar_lea.sflag [#allocation4], %s1914_s21 }
 0x5d7   : > { %p2459_p9 = pnand %p3566_p5, %p3565_p0 }
 0x5d9   : > { %2750 = dma.done.wait (!%p2459_p9), %s1915_s9, 256  }
 0x5da   : > { %2752 = vsyncadd (!%p2459_p9), %s1915_s9, 4294967040  ;;  %p21_p12 = scmp.ge.s32.totalorder %s2979_s18, 4   ;;  %s3567_s27 = smov %s2759_s28 }
 0x5db   : > { %s3568_s28 = smov %s2763_s29  ;;  %s3569_s29 = smov %s2995_s24 }
 0x5dc   : > { %s3570_s30 = smov %s2979_s18  ;;  %23 = sbr.rel (!%p21_p12) target bundleno = 9 (0x9), region = 112 }
 0x5e3   :  { %1920 = vsyncpa [#allocation3], 1 }
 0x5e4   :  { %1922 = vsyncpa [#allocation3 + $0x1], 1 }
 0x5e5   :  { %1923 = vsyncpa [#allocation6], 1 }
 0x5e6   :  { %1924 = vsyncpa [#allocation10], 1 }
 0x5e7   :  { %1925 = vsyncpa [#allocation4], 1 }
 0x5e8   :  { %1927 = vsyncpa [#allocation4 + $0x1], 1 }

</bundles_post_ra>
